<compile_context>
chip_gen: v7x
topology: tpu7x:2x2x1
jax: 0.10.0
libtpu: 0.0.40
codegen_flags: <defaults>
</compile_context>

<pallas_src>
import functools
import math

import jax
import jax.numpy as jnp
from jax.experimental import pallas as pl
from jax.experimental.pallas import tpu as pltpu

# ----------------------------- small config ---------------------------------
VOCAB = 128
HIDDEN = 128
LAYERS = 2
HEADS = 4
KV_HEADS = 2                     # multi-query attention groups (ChatGLM2 style)
HEAD_DIM = HIDDEN // HEADS       # 32
FFN = 256
EPS = 1e-5

# Feed the MXU bf16 (f32 accumulate) on all gens; elementwise math stays f32.
MXU_DTYPE = jnp.bfloat16


def _row_tile(m):
    """Row tile for token-major matmul kernels: as big as fits comfortably."""
    if m <= 256:
        return m
    for t in (256, 128, 64, 32, 16, 8):
        if m % t == 0:
            return t
    return m


# ----------------------------- Pallas kernels -------------------------------
def _ln_matmul_kernel(x_ref, g_ref, w_ref, o_ref, *, eps):
    """RMSNorm prologue + matmul (no bias)."""
    x = x_ref[...]
    var = jnp.mean(x * x, axis=-1, keepdims=True)
    xn = (x * jax.lax.rsqrt(var + eps)) * g_ref[...]
    o_ref[...] = jnp.dot(xn.astype(MXU_DTYPE), w_ref[...].astype(MXU_DTYPE),
                         preferred_element_type=jnp.float32)


def _ln_matmul_bias_kernel(x_ref, g_ref, w_ref, b_ref, o_ref, *, eps):
    """RMSNorm prologue + matmul + bias epilogue."""
    x = x_ref[...]
    var = jnp.mean(x * x, axis=-1, keepdims=True)
    xn = (x * jax.lax.rsqrt(var + eps)) * g_ref[...]
    acc = jnp.dot(xn.astype(MXU_DTYPE), w_ref[...].astype(MXU_DTYPE),
                  preferred_element_type=jnp.float32)
    o_ref[...] = acc + b_ref[...]


def ln_matmul(x, ln_w, w, b=None):
    """y = RMSNorm(x; ln_w) @ w (+ b).  x: [M,K], w: [K,N] -> [M,N] f32."""
    M, K = x.shape
    N = w.shape[1]
    tm = _row_tile(M)

    in_specs = [
        pl.BlockSpec((tm, K), lambda i: (i, 0)),
        pl.BlockSpec((1, K), lambda i: (0, 0)),
        pl.BlockSpec((K, N), lambda i: (0, 0)),   # weight resident across rows
    ]
    args = [x, ln_w.reshape(1, K), w]
    if b is None:
        kernel = functools.partial(_ln_matmul_kernel, eps=EPS)
    else:
        kernel = functools.partial(_ln_matmul_bias_kernel, eps=EPS)
        in_specs.append(pl.BlockSpec((1, N), lambda i: (0, 0)))
        args.append(b.reshape(1, N))

    return pl.pallas_call(
        kernel,
        out_shape=jax.ShapeDtypeStruct((M, N), jnp.float32),
        grid=(M // tm,),
        in_specs=in_specs,
        out_specs=pl.BlockSpec((tm, N), lambda i: (i, 0)),
        compiler_params=pltpu.CompilerParams(dimension_semantics=("parallel",)),
    )(*args)


def _mlp_kernel(x_ref, g_ref, win_ref, wout_ref, o_ref, *, eps, ffn):
    """RMSNorm -> mlp_in matmul -> SwiGLU -> mlp_out matmul -> residual add."""
    x = x_ref[...]
    var = jnp.mean(x * x, axis=-1, keepdims=True)
    xn = (x * jax.lax.rsqrt(var + eps)) * g_ref[...]
    hg = jnp.dot(xn.astype(MXU_DTYPE), win_ref[...].astype(MXU_DTYPE),
                 preferred_element_type=jnp.float32)              # [tm, 2*FFN]
    a = hg[:, :ffn]
    gate = hg[:, ffn:]
    act = (a * jax.nn.sigmoid(a)) * gate                          # SwiGLU, f32 VPU
    o_ref[...] = x + jnp.dot(act.astype(MXU_DTYPE),
                             wout_ref[...].astype(MXU_DTYPE),
                             preferred_element_type=jnp.float32)


def mlp_block(x, ln_w, w_in, w_out):
    """x: [M,H] -> x + MLP(RMSNorm(x)); w_in: [H, 2*FFN], w_out: [FFN, H]."""
    M, H = x.shape
    F2 = w_in.shape[1]
    tm = _row_tile(M)
    return pl.pallas_call(
        functools.partial(_mlp_kernel, eps=EPS, ffn=F2 // 2),
        out_shape=jax.ShapeDtypeStruct((M, H), jnp.float32),
        grid=(M // tm,),
        in_specs=[
            pl.BlockSpec((tm, H), lambda i: (i, 0)),
            pl.BlockSpec((1, H), lambda i: (0, 0)),
            pl.BlockSpec((H, F2), lambda i: (0, 0)),
            pl.BlockSpec((F2 // 2, H), lambda i: (0, 0)),
        ],
        out_specs=pl.BlockSpec((tm, H), lambda i: (i, 0)),
        compiler_params=pltpu.CompilerParams(dimension_semantics=("parallel",)),
    )(x, ln_w.reshape(1, H), w_in, w_out)


def _attn_dense_kernel(mask_ref, h_ref, q_ref, k_ref, v_ref, wd_ref, o_ref, *,
                       heads, kv_heads, head_dim, scale):
    """All heads of one batch element: MQA softmax attention + dense + residual.

    Mask (causal AND padding) is built in-kernel from the [1,S] mask row; K/V
    groups are reused across the query heads of their group (no jnp.repeat).
    Output is lane-dense [S, heads*head_dim], already dense-projected and
    residual-added.
    """
    S = q_ref.shape[1]
    q = q_ref[0].astype(MXU_DTYPE)       # [S, H]
    k = k_ref[0].astype(MXU_DTYPE)       # [S, KV*Dh]
    v = v_ref[0].astype(MXU_DTYPE)       # [S, KV*Dh]
    mask = mask_ref[0]                   # [1, S] (1.0 = attend)

    row = jax.lax.broadcasted_iota(jnp.int32, (S, S), 0)
    col = jax.lax.broadcasted_iota(jnp.int32, (S, S), 1)
    allowed = jnp.logical_and(col <= row, mask > 0.5)             # [S, S]
    bias = jnp.where(allowed, 0.0, -1e9).astype(jnp.float32)

    rep = heads // kv_heads
    ctx_parts = []
    for h in range(heads):               # static unroll (HEADS small)
        g = h // rep
        qh = q[:, h * head_dim:(h + 1) * head_dim]                # [S, Dh]
        kg = k[:, g * head_dim:(g + 1) * head_dim]                # [S, Dh]
        vg = v[:, g * head_dim:(g + 1) * head_dim]                # [S, Dh]
        s = jax.lax.dot_general(qh, kg, (((1,), (1,)), ((), ())),
                                preferred_element_type=jnp.float32)
        s = s * scale + bias
        m = jnp.max(s, axis=-1, keepdims=True)
        p = jnp.exp(s - m)
        denom = jnp.sum(p, axis=-1, keepdims=True)
        p = p * pl.reciprocal(denom, approx=True)                 # EUP divide
        ctx_parts.append(jnp.dot(p.astype(MXU_DTYPE), vg,
                                 preferred_element_type=jnp.float32))
    ctx = jnp.concatenate(ctx_parts, axis=-1)                     # [S, H] lane-dense
    o_ref[0] = h_ref[0] + jnp.dot(ctx.astype(MXU_DTYPE),
                                  wd_ref[...].astype(MXU_DTYPE),
                                  preferred_element_type=jnp.float32)


def attention_dense(q, k, v, mask, h_resid, dense_w):
    """q: [B,S,H], k/v: [B,S,KV*Dh], mask: [B,1,S] f32, h_resid: [B,S,H],
    dense_w: [H,H] -> [B,S,H] = h_resid + attn(q,k,v) @ dense_w."""
    B, S, H = q.shape
    kv_dim = k.shape[-1]
    scale = 1.0 / math.sqrt(HEAD_DIM)
    return pl.pallas_call(
        functools.partial(_attn_dense_kernel, heads=HEADS, kv_heads=KV_HEADS,
                          head_dim=HEAD_DIM, scale=scale),
        out_shape=jax.ShapeDtypeStruct((B, S, H), jnp.float32),
        grid=(B,),
        in_specs=[
            pl.BlockSpec((1, 1, S), lambda b: (b, 0, 0)),
            pl.BlockSpec((1, S, H), lambda b: (b, 0, 0)),
            pl.BlockSpec((1, S, H), lambda b: (b, 0, 0)),
            pl.BlockSpec((1, S, kv_dim), lambda b: (b, 0, 0)),
            pl.BlockSpec((1, S, kv_dim), lambda b: (b, 0, 0)),
            pl.BlockSpec((H, H), lambda b: (0, 0)),   # dense weight resident
        ],
        out_specs=pl.BlockSpec((1, S, H), lambda b: (b, 0, 0)),
        compiler_params=pltpu.CompilerParams(dimension_semantics=("parallel",)),
    )(mask, h_resid, q, k, v, dense_w)


# ------------------------------- JAX glue ------------------------------------
def build_rope_cache(seq_len):
    # ChatGLM2 RotaryEmbedding(dim = head_dim // 2), interleaved cos/sin pairs.
    dim = HEAD_DIM // 2
    theta = 1.0 / (10000.0 ** (jnp.arange(0, dim, 2, dtype=jnp.float32) / dim))
    idx = jnp.arange(seq_len, dtype=jnp.float32)
    idx_theta = jnp.outer(idx, theta)                              # [S, dim//2]
    return jnp.stack([jnp.cos(idx_theta), jnp.sin(idx_theta)], axis=-1)  # [S, R, 2]


def apply_rotary(x, rope):
    # x: [B, S, nH, Dh] (token-major, no transposes); rope: [B, S, R, 2], 2R = Dh//2.
    # TODO(synk): rotary is plain elementwise math fused by XLA under jit;
    #             full in-kernel fusion (pltpu.roll-style) left out at toy shapes.
    B, S, nH, Dh = x.shape
    R = rope.shape[2]
    rot = x[..., : 2 * R].reshape(B, S, nH, R, 2)
    x_pass = x[..., 2 * R:]
    rc = rope[:, :, None]                                          # [B,S,1,R,2]
    x0 = rot[..., 0] * rc[..., 0] - rot[..., 1] * rc[..., 1]
    x1 = rot[..., 1] * rc[..., 0] + rot[..., 0] * rc[..., 1]
    out = jnp.stack([x0, x1], axis=-1).reshape(B, S, nH, 2 * R)
    return jnp.concatenate([out, x_pass], axis=-1)


def init_params(key):
    keys = iter(jax.random.split(key, 8 + 8 * LAYERS))

    def nrm(shape, scale=0.02):
        return scale * jax.random.normal(next(keys), shape, dtype=jnp.float32)

    qkv_out = HIDDEN + 2 * KV_HEADS * HEAD_DIM
    params = {
        "embedding": nrm((VOCAB, HIDDEN)),
        "final_ln": jnp.ones((HIDDEN,), jnp.float32),
        "lm_head_w": nrm((HIDDEN, VOCAB)),
        "layers": [],
    }
    for _ in range(LAYERS):
        params["layers"].append({
            "input_ln": jnp.ones((HIDDEN,), jnp.float32),
            "qkv_w": nrm((HIDDEN, qkv_out)),
            "qkv_b": nrm((qkv_out,)),
            "dense_w": nrm((HIDDEN, HIDDEN)),
            "post_ln": jnp.ones((HIDDEN,), jnp.float32),
            "mlp_in_w": nrm((HIDDEN, 2 * FFN)),
            "mlp_out_w": nrm((FFN, HIDDEN)),
        })
    return params


@jax.jit
def forward(params, rope_cache, input_ids, attention_mask, position_ids):
    B, S = input_ids.shape
    kv_dim = KV_HEADS * HEAD_DIM

    # TODO(synk): embedding gather stays as an XLA gather (no clean Pallas gather here).
    h = jnp.take(params["embedding"], input_ids, axis=0)           # [B,S,H]
    rope = rope_cache[position_ids]                                # [B,S,R,2]
    mask_f = attention_mask.astype(jnp.float32).reshape(B, 1, S)   # [B,1,S]

    for layer in params["layers"]:
        # ---- self attention block (2 pallas_calls, residual fused) ----------
        qkv = ln_matmul(h.reshape(B * S, HIDDEN),
                        layer["input_ln"], layer["qkv_w"], layer["qkv_b"])
        qkv = qkv.reshape(B, S, HIDDEN + 2 * kv_dim)
        q = qkv[..., :HIDDEN].reshape(B, S, HEADS, HEAD_DIM)
        k = qkv[..., HIDDEN:HIDDEN + kv_dim].reshape(B, S, KV_HEADS, HEAD_DIM)
        v = qkv[..., HIDDEN + kv_dim:]                             # [B,S,kv_dim]

        q = apply_rotary(q, rope).reshape(B, S, HIDDEN)            # token-major
        k = apply_rotary(k, rope).reshape(B, S, kv_dim)

        h = attention_dense(q, k, v, mask_f, h, layer["dense_w"])  # [B,S,H]

        # ---- MLP block (SwiGLU, 1 pallas_call, residual fused) --------------
        h = mlp_block(h.reshape(B * S, HIDDEN), layer["post_ln"],
                      layer["mlp_in_w"], layer["mlp_out_w"]).reshape(B, S, HIDDEN)

    # return_last_logit=True: final norm + LM head on the last token only.
    last = h[:, -1, :]                                             # [B, H]
    logits = ln_matmul(last, params["final_ln"], params["lm_head_w"])  # [B, VOCAB]
    return (logits[:, None, :],)                                   # ([B,1,VOCAB],)


# --------------------------------- main --------------------------------------
if __name__ == "__main__":
    key = jax.random.PRNGKey(0)
    pkey, ikey = jax.random.split(key)

    B, S = 2, 8
    params = init_params(pkey)
    rope_cache = build_rope_cache(S)

    input_ids = jax.random.randint(ikey, (B, S), 0, VOCAB, dtype=jnp.int32)
    attention_mask = jnp.ones((B, S), jnp.int32).at[1, :2].set(0)   # some padding
    position_ids = jnp.broadcast_to(jnp.arange(S, dtype=jnp.int32), (B, S))

    (logits,) = forward(params, rope_cache, input_ids, attention_mask, position_ids)
    jax.block_until_ready(logits)

    assert logits.shape == (B, 1, VOCAB), logits.shape
    assert logits.dtype == jnp.float32
    assert bool(jnp.all(jnp.isfinite(logits)))
    print("KERNEL_OK")
</pallas_src>

<mosaic_0001>
module attributes {stable_mosaic.version = 11 : i64} {
  func.func @_ln_matmul_bias_kernel(%arg0: i32, %arg1: memref<16x128xf32, #tpu.memory_space<vmem>>, %arg2: memref<1x128xf32, #tpu.memory_space<vmem>>, %arg3: memref<128x256xf32, #tpu.memory_space<vmem>>, %arg4: memref<1x256xf32, #tpu.memory_space<vmem>>, %arg5: memref<16x256xf32, #tpu.memory_space<vmem>>) attributes {dimension_semantics = [#tpu.dimension_semantics<parallel>], iteration_bounds = array<i64: 1>, scalar_prefetch = 0 : i64, scratch_operands = 0 : i64, tpu.core_type = #tpu.core_type<tc>, window_params = [{transform_indices = @transform_0, window_bounds = array<i64: 16, 128>}, {pipeline_mode = #tpu.pipeline_mode<synchronous>, transform_indices = @transform_1, window_bounds = array<i64: 1, 128>}, {pipeline_mode = #tpu.pipeline_mode<synchronous>, transform_indices = @transform_2, window_bounds = array<i64: 128, 256>}, {pipeline_mode = #tpu.pipeline_mode<synchronous>, transform_indices = @transform_3, window_bounds = array<i64: 1, 256>}, {transform_indices = @transform_4, window_bounds = array<i64: 16, 256>}]} {
    %c0 = arith.constant 0 : index
    %c0_0 = arith.constant 0 : index
    %0 = vector.load %arg1[%c0, %c0_0] : memref<16x128xf32, #tpu.memory_space<vmem>>, vector<16x128xf32>
    %1 = arith.mulf %0, %0 : vector<16x128xf32>
    %cst = arith.constant dense<0.000000e+00> : vector<16xf32>
    %2 = vector.multi_reduction <add>, %1, %cst [1] : vector<16x128xf32> to vector<16xf32>
    %3 = vector.shape_cast %2 : vector<16xf32> to vector<16x1xf32>
    %cst_1 = arith.constant 1.280000e+02 : f32
    %4 = vector.broadcast %cst_1 : f32 to vector<16x1xf32>
    %5 = arith.divf %3, %4 : vector<16x1xf32>
    %cst_2 = arith.constant 9.99999974E-6 : f32
    %6 = vector.broadcast %cst_2 : f32 to vector<16x1xf32>
    %7 = arith.addf %5, %6 : vector<16x1xf32>
    %8 = math.rsqrt %7 : vector<16x1xf32>
    %9 = vector.broadcast %8 : vector<16x1xf32> to vector<16x128xf32>
    %10 = arith.mulf %0, %9 : vector<16x128xf32>
    %c0_3 = arith.constant 0 : index
    %c0_4 = arith.constant 0 : index
    %11 = vector.load %arg2[%c0_3, %c0_4] : memref<1x128xf32, #tpu.memory_space<vmem>>, vector<1x128xf32>
    %12 = vector.broadcast %11 : vector<1x128xf32> to vector<16x128xf32>
    %13 = arith.mulf %10, %12 : vector<16x128xf32>
    %14 = arith.truncf %13 : vector<16x128xf32> to vector<16x128xbf16>
    %c0_5 = arith.constant 0 : index
    %c0_6 = arith.constant 0 : index
    %15 = vector.load %arg3[%c0_5, %c0_6] : memref<128x256xf32, #tpu.memory_space<vmem>>, vector<128x256xf32>
    %16 = arith.truncf %15 : vector<128x256xf32> to vector<128x256xbf16>
    %cst_7 = arith.constant dense<0.000000e+00> : vector<16x256xf32>
    %17 = tpu.matmul %14, %16, %cst_7 {dimension_numbers = #tpu.dot_dimension_numbers<[1], [0], [0], [1], [0, 0, 1, 1], [], []>} : vector<16x128xbf16>, vector<128x256xbf16>, vector<16x256xf32> -> vector<16x256xf32>
    %c0_8 = arith.constant 0 : index
    %c0_9 = arith.constant 0 : index
    %18 = vector.load %arg4[%c0_8, %c0_9] : memref<1x256xf32, #tpu.memory_space<vmem>>, vector<1x256xf32>
    %19 = vector.broadcast %18 : vector<1x256xf32> to vector<16x256xf32>
    %20 = arith.addf %17, %19 : vector<16x256xf32>
    %c0_10 = arith.constant 0 : index
    %c0_11 = arith.constant 0 : index
    %21 = vector.load %arg5[%c0_10, %c0_11] : memref<16x256xf32, #tpu.memory_space<vmem>>, vector<16x256xf32>
    tpu.vector_store %arg5[%c0_10, %c0_11], %20 {strides = array<i32>} : memref<16x256xf32, #tpu.memory_space<vmem>>, vector<16x256xf32>,
    return
  }
  func.func @transform_0(%arg0: i32) -> (i32, i32) {
    %c0_i32 = arith.constant 0 : i32
    %c0_i32_0 = arith.constant 0 : i32
    return %arg0, %c0_i32 : i32, i32
  }
  func.func @transform_1(%arg0: i32) -> (i32, i32) {
    %c0_i32 = arith.constant 0 : i32
    %c0_i32_0 = arith.constant 0 : i32
    %c0_i32_1 = arith.constant 0 : i32
    return %c0_i32, %c0_i32_0 : i32, i32
  }
  func.func @transform_2(%arg0: i32) -> (i32, i32) {
    %c0_i32 = arith.constant 0 : i32
    %c0_i32_0 = arith.constant 0 : i32
    %c0_i32_1 = arith.constant 0 : i32
    return %c0_i32, %c0_i32_0 : i32, i32
  }
  func.func @transform_3(%arg0: i32) -> (i32, i32) {
    %c0_i32 = arith.constant 0 : i32
    %c0_i32_0 = arith.constant 0 : i32
    %c0_i32_1 = arith.constant 0 : i32
    return %c0_i32, %c0_i32_0 : i32, i32
  }
  func.func @transform_4(%arg0: i32) -> (i32, i32) {
    %c0_i32 = arith.constant 0 : i32
    %c0_i32_0 = arith.constant 0 : i32
    return %arg0, %c0_i32 : i32, i32
  }
}

module attributes {stable_mosaic.version = 11 : i64} {
  func.func @_attn_dense_kernel(%arg0: i32, %arg1: memref<1x1x8xf32, #tpu.memory_space<vmem>>, %arg2: memref<1x8x128xf32, #tpu.memory_space<vmem>>, %arg3: memref<1x8x128xf32, #tpu.memory_space<vmem>>, %arg4: memref<1x8x64xf32, #tpu.memory_space<vmem>>, %arg5: memref<1x8x64xf32, #tpu.memory_space<vmem>>, %arg6: memref<128x128xf32, #tpu.memory_space<vmem>>, %arg7: memref<1x8x128xf32, #tpu.memory_space<vmem>>) attributes {dimension_semantics = [#tpu.dimension_semantics<parallel>], iteration_bounds = array<i64: 2>, scalar_prefetch = 0 : i64, scratch_operands = 0 : i64, tpu.core_type = #tpu.core_type<tc>, window_params = [{transform_indices = @transform_0, window_bounds = array<i64: 1, 1, 8>}, {transform_indices = @transform_1, window_bounds = array<i64: 1, 8, 128>}, {transform_indices = @transform_2, window_bounds = array<i64: 1, 8, 128>}, {transform_indices = @transform_3, window_bounds = array<i64: 1, 8, 64>}, {transform_indices = @transform_4, window_bounds = array<i64: 1, 8, 64>}, {pipeline_mode = #tpu.pipeline_mode<synchronous>, transform_indices = @transform_5, window_bounds = array<i64: 128, 128>}, {transform_indices = @transform_6, window_bounds = array<i64: 1, 8, 128>}]} {
    %c0 = arith.constant 0 : index
    %c0_0 = arith.constant 0 : index
    %c0_1 = arith.constant 0 : index
    %0 = vector.load %arg3[%c0, %c0_0, %c0_1] : memref<1x8x128xf32, #tpu.memory_space<vmem>>, vector<1x8x128xf32>
    %1 = vector.shape_cast %0 : vector<1x8x128xf32> to vector<8x128xf32>
    %2 = arith.truncf %1 : vector<8x128xf32> to vector<8x128xbf16>
    %c0_2 = arith.constant 0 : index
    %c0_3 = arith.constant 0 : index
    %c0_4 = arith.constant 0 : index
    %3 = vector.load %arg4[%c0_2, %c0_3, %c0_4] : memref<1x8x64xf32, #tpu.memory_space<vmem>>, vector<1x8x64xf32>
    %4 = vector.shape_cast %3 : vector<1x8x64xf32> to vector<8x64xf32>
    %5 = arith.truncf %4 : vector<8x64xf32> to vector<8x64xbf16>
    %c0_5 = arith.constant 0 : index
    %c0_6 = arith.constant 0 : index
    %c0_7 = arith.constant 0 : index
    %6 = vector.load %arg5[%c0_5, %c0_6, %c0_7] : memref<1x8x64xf32, #tpu.memory_space<vmem>>, vector<1x8x64xf32>
    %7 = vector.shape_cast %6 : vector<1x8x64xf32> to vector<8x64xf32>
    %8 = arith.truncf %7 : vector<8x64xf32> to vector<8x64xbf16>
    %c0_8 = arith.constant 0 : index
    %c0_9 = arith.constant 0 : index
    %c0_10 = arith.constant 0 : index
    %9 = vector.load %arg1[%c0_8, %c0_9, %c0_10] : memref<1x1x8xf32, #tpu.memory_space<vmem>>, vector<1x1x8xf32>
    %10 = vector.shape_cast %9 : vector<1x1x8xf32> to vector<1x8xf32>
    %11 = tpu.iota {dimensions = array<i32: 0>} : vector<8x8xi32>
    %12 = tpu.iota {dimensions = array<i32: 1>} : vector<8x8xi32>
    %13 = arith.cmpi sle, %12, %11 : vector<8x8xi32>
    %cst = arith.constant 5.000000e-01 : f32
    %14 = vector.broadcast %cst : f32 to vector<1x8xf32>
    %15 = arith.cmpf ogt, %10, %14 : vector<1x8xf32>
    %16 = vector.broadcast %15 : vector<1x8xi1> to vector<8x8xi1>
    %17 = arith.andi %13, %16 : vector<8x8xi1>
    %cst_11 = arith.constant 0.000000e+00 : f32
    %cst_12 = arith.constant -1.000000e+09 : f32
    %18 = vector.broadcast %cst_11 : f32 to vector<8x8xf32>
    %19 = vector.broadcast %cst_12 : f32 to vector<8x8xf32>
    %20 = arith.select %17, %18, %19 : vector<8x8xi1>, vector<8x8xf32>
    %21 = vector.extract_strided_slice %2 {offsets = [0, 0], sizes = [8, 32], strides = [1, 1]} : vector<8x128xbf16> to vector<8x32xbf16>
    %22 = vector.extract_strided_slice %5 {offsets = [0, 0], sizes = [8, 32], strides = [1, 1]} : vector<8x64xbf16> to vector<8x32xbf16>
    %23 = vector.extract_strided_slice %8 {offsets = [0, 0], sizes = [8, 32], strides = [1, 1]} : vector<8x64xbf16> to vector<8x32xbf16>
    %cst_13 = arith.constant dense<0.000000e+00> : vector<8x8xf32>
    %24 = tpu.matmul %21, %22, %cst_13 {dimension_numbers = #tpu.dot_dimension_numbers<[1], [1], [0], [0], [0, 0, 1, 0], [], []>} : vector<8x32xbf16>, vector<8x32xbf16>, vector<8x8xf32> -> vector<8x8xf32>
    %cst_14 = arith.constant 0.176776692 : f32
    %25 = vector.broadcast %cst_14 : f32 to vector<8x8xf32>
    %26 = arith.mulf %24, %25 : vector<8x8xf32>
    %27 = arith.addf %26, %20 : vector<8x8xf32>
    %cst_15 = arith.constant dense<0xFF800000> : vector<8xf32>
    %28 = vector.multi_reduction <maximumf>, %27, %cst_15 [1] : vector<8x8xf32> to vector<8xf32>
    %29 = vector.shape_cast %28 : vector<8xf32> to vector<8x1xf32>
    %30 = vector.broadcast %29 : vector<8x1xf32> to vector<8x8xf32>
    %31 = arith.subf %27, %30 : vector<8x8xf32>
    %32 = math.exp %31 : vector<8x8xf32>
    %cst_16 = arith.constant dense<0.000000e+00> : vector<8xf32>
    %33 = vector.multi_reduction <add>, %32, %cst_16 [1] : vector<8x8xf32> to vector<8xf32>
    %34 = vector.shape_cast %33 : vector<8xf32> to vector<8x1xf32>
    %35 = tpu.reciprocal %34 {approx = true} : vector<8x1xf32> -> vector<8x1xf32>
    %36 = vector.broadcast %35 : vector<8x1xf32> to vector<8x8xf32>
    %37 = arith.mulf %32, %36 : vector<8x8xf32>
    %38 = arith.truncf %37 : vector<8x8xf32> to vector<8x8xbf16>
    %cst_17 = arith.constant dense<0.000000e+00> : vector<8x32xf32>
    %39 = tpu.matmul %38, %23, %cst_17 {dimension_numbers = #tpu.dot_dimension_numbers<[1], [0], [0], [1], [0, 0, 1, 1], [], []>} : vector<8x8xbf16>, vector<8x32xbf16>, vector<8x32xf32> -> vector<8x32xf32>
    %40 = vector.extract_strided_slice %2 {offsets = [0, 32], sizes = [8, 32], strides = [1, 1]} : vector<8x128xbf16> to vector<8x32xbf16>
    %41 = vector.extract_strided_slice %5 {offsets = [0, 0], sizes = [8, 32], strides = [1, 1]} : vector<8x64xbf16> to vector<8x32xbf16>
    %42 = vector.extract_strided_slice %8 {offsets = [0, 0], sizes = [8, 32], strides = [1, 1]} : vector<8x64xbf16> to vector<8x32xbf16>
    %cst_18 = arith.constant dense<0.000000e+00> : vector<8x8xf32>
    %43 = tpu.matmul %40, %41, %cst_18 {dimension_numbers = #tpu.dot_dimension_numbers<[1], [1], [0], [0], [0, 0, 1, 0], [], []>} : vector<8x32xbf16>, vector<8x32xbf16>, vector<8x8xf32> -> vector<8x8xf32>
    %cst_19 = arith.constant 0.176776692 : f32
    %44 = vector.broadcast %cst_19 : f32 to vector<8x8xf32>
    %45 = arith.mulf %43, %44 : vector<8x8xf32>
    %46 = arith.addf %45, %20 : vector<8x8xf32>
    %cst_20 = arith.constant dense<0xFF800000> : vector<8xf32>
    %47 = vector.multi_reduction <maximumf>, %46, %cst_20 [1] : vector<8x8xf32> to vector<8xf32>
    %48 = vector.shape_cast %47 : vector<8xf32> to vector<8x1xf32>
    %49 = vector.broadcast %48 : vector<8x1xf32> to vector<8x8xf32>
    %50 = arith.subf %46, %49 : vector<8x8xf32>
    %51 = math.exp %50 : vector<8x8xf32>
    %cst_21 = arith.constant dense<0.000000e+00> : vector<8xf32>
    %52 = vector.multi_reduction <add>, %51, %cst_21 [1] : vector<8x8xf32> to vector<8xf32>
    %53 = vector.shape_cast %52 : vector<8xf32> to vector<8x1xf32>
    %54 = tpu.reciprocal %53 {approx = true} : vector<8x1xf32> -> vector<8x1xf32>
    %55 = vector.broadcast %54 : vector<8x1xf32> to vector<8x8xf32>
    %56 = arith.mulf %51, %55 : vector<8x8xf32>
    %57 = arith.truncf %56 : vector<8x8xf32> to vector<8x8xbf16>
    %cst_22 = arith.constant dense<0.000000e+00> : vector<8x32xf32>
    %58 = tpu.matmul %57, %42, %cst_22 {dimension_numbers = #tpu.dot_dimension_numbers<[1], [0], [0], [1], [0, 0, 1, 1], [], []>} : vector<8x8xbf16>, vector<8x32xbf16>, vector<8x32xf32> -> vector<8x32xf32>
    %59 = vector.extract_strided_slice %2 {offsets = [0, 64], sizes = [8, 32], strides = [1, 1]} : vector<8x128xbf16> to vector<8x32xbf16>
    %60 = vector.extract_strided_slice %5 {offsets = [0, 32], sizes = [8, 32], strides = [1, 1]} : vector<8x64xbf16> to vector<8x32xbf16>
    %61 = vector.extract_strided_slice %8 {offsets = [0, 32], sizes = [8, 32], strides = [1, 1]} : vector<8x64xbf16> to vector<8x32xbf16>
    %cst_23 = arith.constant dense<0.000000e+00> : vector<8x8xf32>
    %62 = tpu.matmul %59, %60, %cst_23 {dimension_numbers = #tpu.dot_dimension_numbers<[1], [1], [0], [0], [0, 0, 1, 0], [], []>} : vector<8x32xbf16>, vector<8x32xbf16>, vector<8x8xf32> -> vector<8x8xf32>
    %cst_24 = arith.constant 0.176776692 : f32
    %63 = vector.broadcast %cst_24 : f32 to vector<8x8xf32>
    %64 = arith.mulf %62, %63 : vector<8x8xf32>
    %65 = arith.addf %64, %20 : vector<8x8xf32>
    %cst_25 = arith.constant dense<0xFF800000> : vector<8xf32>
    %66 = vector.multi_reduction <maximumf>, %65, %cst_25 [1] : vector<8x8xf32> to vector<8xf32>
    %67 = vector.shape_cast %66 : vector<8xf32> to vector<8x1xf32>
    %68 = vector.broadcast %67 : vector<8x1xf32> to vector<8x8xf32>
    %69 = arith.subf %65, %68 : vector<8x8xf32>
    %70 = math.exp %69 : vector<8x8xf32>
    %cst_26 = arith.constant dense<0.000000e+00> : vector<8xf32>
    %71 = vector.multi_reduction <add>, %70, %cst_26 [1] : vector<8x8xf32> to vector<8xf32>
    %72 = vector.shape_cast %71 : vector<8xf32> to vector<8x1xf32>
    %73 = tpu.reciprocal %72 {approx = true} : vector<8x1xf32> -> vector<8x1xf32>
    %74 = vector.broadcast %73 : vector<8x1xf32> to vector<8x8xf32>
    %75 = arith.mulf %70, %74 : vector<8x8xf32>
    %76 = arith.truncf %75 : vector<8x8xf32> to vector<8x8xbf16>
    %cst_27 = arith.constant dense<0.000000e+00> : vector<8x32xf32>
    %77 = tpu.matmul %76, %61, %cst_27 {dimension_numbers = #tpu.dot_dimension_numbers<[1], [0], [0], [1], [0, 0, 1, 1], [], []>} : vector<8x8xbf16>, vector<8x32xbf16>, vector<8x32xf32> -> vector<8x32xf32>
    %78 = vector.extract_strided_slice %2 {offsets = [0, 96], sizes = [8, 32], strides = [1, 1]} : vector<8x128xbf16> to vector<8x32xbf16>
    %79 = vector.extract_strided_slice %5 {offsets = [0, 32], sizes = [8, 32], strides = [1, 1]} : vector<8x64xbf16> to vector<8x32xbf16>
    %80 = vector.extract_strided_slice %8 {offsets = [0, 32], sizes = [8, 32], strides = [1, 1]} : vector<8x64xbf16> to vector<8x32xbf16>
    %cst_28 = arith.constant dense<0.000000e+00> : vector<8x8xf32>
    %81 = tpu.matmul %78, %79, %cst_28 {dimension_numbers = #tpu.dot_dimension_numbers<[1], [1], [0], [0], [0, 0, 1, 0], [], []>} : vector<8x32xbf16>, vector<8x32xbf16>, vector<8x8xf32> -> vector<8x8xf32>
    %cst_29 = arith.constant 0.176776692 : f32
    %82 = vector.broadcast %cst_29 : f32 to vector<8x8xf32>
    %83 = arith.mulf %81, %82 : vector<8x8xf32>
    %84 = arith.addf %83, %20 : vector<8x8xf32>
    %cst_30 = arith.constant dense<0xFF800000> : vector<8xf32>
    %85 = vector.multi_reduction <maximumf>, %84, %cst_30 [1] : vector<8x8xf32> to vector<8xf32>
    %86 = vector.shape_cast %85 : vector<8xf32> to vector<8x1xf32>
    %87 = vector.broadcast %86 : vector<8x1xf32> to vector<8x8xf32>
    %88 = arith.subf %84, %87 : vector<8x8xf32>
    %89 = math.exp %88 : vector<8x8xf32>
    %cst_31 = arith.constant dense<0.000000e+00> : vector<8xf32>
    %90 = vector.multi_reduction <add>, %89, %cst_31 [1] : vector<8x8xf32> to vector<8xf32>
    %91 = vector.shape_cast %90 : vector<8xf32> to vector<8x1xf32>
    %92 = tpu.reciprocal %91 {approx = true} : vector<8x1xf32> -> vector<8x1xf32>
    %93 = vector.broadcast %92 : vector<8x1xf32> to vector<8x8xf32>
    %94 = arith.mulf %89, %93 : vector<8x8xf32>
    %95 = arith.truncf %94 : vector<8x8xf32> to vector<8x8xbf16>
    %cst_32 = arith.constant dense<0.000000e+00> : vector<8x32xf32>
    %96 = tpu.matmul %95, %80, %cst_32 {dimension_numbers = #tpu.dot_dimension_numbers<[1], [0], [0], [1], [0, 0, 1, 1], [], []>} : vector<8x8xbf16>, vector<8x32xbf16>, vector<8x32xf32> -> vector<8x32xf32>
    %97 = tpu.concatenate %39, %58, %77, %96 in 1 : vector<8x32xf32>, vector<8x32xf32>, vector<8x32xf32>, vector<8x32xf32> -> vector<8x128xf32>
    %c0_33 = arith.constant 0 : index
    %c0_34 = arith.constant 0 : index
    %c0_35 = arith.constant 0 : index
    %98 = vector.load %arg2[%c0_33, %c0_34, %c0_35] : memref<1x8x128xf32, #tpu.memory_space<vmem>>, vector<1x8x128xf32>
    %99 = vector.shape_cast %98 : vector<1x8x128xf32> to vector<8x128xf32>
    %100 = arith.truncf %97 : vector<8x128xf32> to vector<8x128xbf16>
    %c0_36 = arith.constant 0 : index
    %c0_37 = arith.constant 0 : index
    %101 = vector.load %arg6[%c0_36, %c0_37] : memref<128x128xf32, #tpu.memory_space<vmem>>, vector<128x128xf32>
    %102 = arith.truncf %101 : vector<128x128xf32> to vector<128x128xbf16>
    %cst_38 = arith.constant dense<0.000000e+00> : vector<8x128xf32>
    %103 = tpu.matmul %100, %102, %cst_38 {dimension_numbers = #tpu.dot_dimension_numbers<[1], [0], [0], [1], [0, 0, 1, 1], [], []>} : vector<8x128xbf16>, vector<128x128xbf16>, vector<8x128xf32> -> vector<8x128xf32>
    %104 = arith.addf %99, %103 : vector<8x128xf32>
    %c0_39 = arith.constant 0 : index
    %c0_40 = arith.constant 0 : index
    %c0_41 = arith.constant 0 : index
    %105 = vector.load %arg7[%c0_39, %c0_40, %c0_41] : memref<1x8x128xf32, #tpu.memory_space<vmem>>, vector<1x8x128xf32>
    %106 = vector.shape_cast %105 : vector<1x8x128xf32> to vector<8x128xf32>
    %107 = vector.shape_cast %104 : vector<8x128xf32> to vector<1x8x128xf32>
    tpu.vector_store %arg7[%c0_39, %c0_40, %c0_41], %107 {strides = array<i32>} : memref<1x8x128xf32, #tpu.memory_space<vmem>>, vector<1x8x128xf32>,
    return
  }
  func.func @transform_0(%arg0: i32) -> (i32, i32, i32) {
    %c0_i32 = arith.constant 0 : i32
    %c0_i32_0 = arith.constant 0 : i32
    %c0_i32_1 = arith.constant 0 : i32
    return %arg0, %c0_i32, %c0_i32_0 : i32, i32, i32
  }
  func.func @transform_1(%arg0: i32) -> (i32, i32, i32) {
    %c0_i32 = arith.constant 0 : i32
    %c0_i32_0 = arith.constant 0 : i32
    %c0_i32_1 = arith.constant 0 : i32
    return %arg0, %c0_i32, %c0_i32_0 : i32, i32, i32
  }
  func.func @transform_2(%arg0: i32) -> (i32, i32, i32) {
    %c0_i32 = arith.constant 0 : i32
    %c0_i32_0 = arith.constant 0 : i32
    %c0_i32_1 = arith.constant 0 : i32
    return %arg0, %c0_i32, %c0_i32_0 : i32, i32, i32
  }
  func.func @transform_3(%arg0: i32) -> (i32, i32, i32) {
    %c0_i32 = arith.constant 0 : i32
    %c0_i32_0 = arith.constant 0 : i32
    %c0_i32_1 = arith.constant 0 : i32
    return %arg0, %c0_i32, %c0_i32_0 : i32, i32, i32
  }
  func.func @transform_4(%arg0: i32) -> (i32, i32, i32) {
    %c0_i32 = arith.constant 0 : i32
    %c0_i32_0 = arith.constant 0 : i32
    %c0_i32_1 = arith.constant 0 : i32
    return %arg0, %c0_i32, %c0_i32_0 : i32, i32, i32
  }
  func.func @transform_5(%arg0: i32) -> (i32, i32) {
    %c0_i32 = arith.constant 0 : i32
    %c0_i32_0 = arith.constant 0 : i32
    %c0_i32_1 = arith.constant 0 : i32
    return %c0_i32, %c0_i32_0 : i32, i32
  }
  func.func @transform_6(%arg0: i32) -> (i32, i32, i32) {
    %c0_i32 = arith.constant 0 : i32
    %c0_i32_0 = arith.constant 0 : i32
    %c0_i32_1 = arith.constant 0 : i32
    return %arg0, %c0_i32, %c0_i32_0 : i32, i32, i32
  }
}

module attributes {stable_mosaic.version = 11 : i64} {
  func.func @_mlp_kernel(%arg0: i32, %arg1: memref<16x128xf32, #tpu.memory_space<vmem>>, %arg2: memref<1x128xf32, #tpu.memory_space<vmem>>, %arg3: memref<128x512xf32, #tpu.memory_space<vmem>>, %arg4: memref<256x128xf32, #tpu.memory_space<vmem>>, %arg5: memref<16x128xf32, #tpu.memory_space<vmem>>) attributes {dimension_semantics = [#tpu.dimension_semantics<parallel>], iteration_bounds = array<i64: 1>, scalar_prefetch = 0 : i64, scratch_operands = 0 : i64, tpu.core_type = #tpu.core_type<tc>, window_params = [{transform_indices = @transform_0, window_bounds = array<i64: 16, 128>}, {pipeline_mode = #tpu.pipeline_mode<synchronous>, transform_indices = @transform_1, window_bounds = array<i64: 1, 128>}, {pipeline_mode = #tpu.pipeline_mode<synchronous>, transform_indices = @transform_2, window_bounds = array<i64: 128, 512>}, {pipeline_mode = #tpu.pipeline_mode<synchronous>, transform_indices = @transform_3, window_bounds = array<i64: 256, 128>}, {transform_indices = @transform_4, window_bounds = array<i64: 16, 128>}]} {
    %c0 = arith.constant 0 : index
    %c0_0 = arith.constant 0 : index
    %0 = vector.load %arg1[%c0, %c0_0] : memref<16x128xf32, #tpu.memory_space<vmem>>, vector<16x128xf32>
    %1 = arith.mulf %0, %0 : vector<16x128xf32>
    %cst = arith.constant dense<0.000000e+00> : vector<16xf32>
    %2 = vector.multi_reduction <add>, %1, %cst [1] : vector<16x128xf32> to vector<16xf32>
    %3 = vector.shape_cast %2 : vector<16xf32> to vector<16x1xf32>
    %cst_1 = arith.constant 1.280000e+02 : f32
    %4 = vector.broadcast %cst_1 : f32 to vector<16x1xf32>
    %5 = arith.divf %3, %4 : vector<16x1xf32>
    %cst_2 = arith.constant 9.99999974E-6 : f32
    %6 = vector.broadcast %cst_2 : f32 to vector<16x1xf32>
    %7 = arith.addf %5, %6 : vector<16x1xf32>
    %8 = math.rsqrt %7 : vector<16x1xf32>
    %9 = vector.broadcast %8 : vector<16x1xf32> to vector<16x128xf32>
    %10 = arith.mulf %0, %9 : vector<16x128xf32>
    %c0_3 = arith.constant 0 : index
    %c0_4 = arith.constant 0 : index
    %11 = vector.load %arg2[%c0_3, %c0_4] : memref<1x128xf32, #tpu.memory_space<vmem>>, vector<1x128xf32>
    %12 = vector.broadcast %11 : vector<1x128xf32> to vector<16x128xf32>
    %13 = arith.mulf %10, %12 : vector<16x128xf32>
    %14 = arith.truncf %13 : vector<16x128xf32> to vector<16x128xbf16>
    %c0_5 = arith.constant 0 : index
    %c0_6 = arith.constant 0 : index
    %15 = vector.load %arg3[%c0_5, %c0_6] : memref<128x512xf32, #tpu.memory_space<vmem>>, vector<128x512xf32>
    %16 = arith.truncf %15 : vector<128x512xf32> to vector<128x512xbf16>
    %cst_7 = arith.constant dense<0.000000e+00> : vector<16x512xf32>
    %17 = tpu.matmul %14, %16, %cst_7 {dimension_numbers = #tpu.dot_dimension_numbers<[1], [0], [0], [1], [0, 0, 1, 1], [], []>} : vector<16x128xbf16>, vector<128x512xbf16>, vector<16x512xf32> -> vector<16x512xf32>
    %18 = vector.extract_strided_slice %17 {offsets = [0, 0], sizes = [16, 256], strides = [1, 1]} : vector<16x512xf32> to vector<16x256xf32>
    %19 = vector.extract_strided_slice %17 {offsets = [0, 256], sizes = [16, 256], strides = [1, 1]} : vector<16x512xf32> to vector<16x256xf32>
    %20 = arith.negf %18 : vector<16x256xf32>
    %21 = math.exp %20 : vector<16x256xf32>
    %cst_8 = arith.constant 1.000000e+00 : f32
    %22 = vector.broadcast %cst_8 : f32 to vector<16x256xf32>
    %23 = arith.addf %22, %21 : vector<16x256xf32>
    %24 = arith.divf %22, %23 : vector<16x256xf32>
    %25 = arith.mulf %18, %24 : vector<16x256xf32>
    %26 = arith.mulf %25, %19 : vector<16x256xf32>
    %27 = arith.truncf %26 : vector<16x256xf32> to vector<16x256xbf16>
    %c0_9 = arith.constant 0 : index
    %c0_10 = arith.constant 0 : index
    %28 = vector.load %arg4[%c0_9, %c0_10] : memref<256x128xf32, #tpu.memory_space<vmem>>, vector<256x128xf32>
    %29 = arith.truncf %28 : vector<256x128xf32> to vector<256x128xbf16>
    %cst_11 = arith.constant dense<0.000000e+00> : vector<16x128xf32>
    %30 = tpu.matmul %27, %29, %cst_11 {dimension_numbers = #tpu.dot_dimension_numbers<[1], [0], [0], [1], [0, 0, 1, 1], [], []>} : vector<16x256xbf16>, vector<256x128xbf16>, vector<16x128xf32> -> vector<16x128xf32>
    %31 = arith.addf %0, %30 : vector<16x128xf32>
    %c0_12 = arith.constant 0 : index
    %c0_13 = arith.constant 0 : index
    %32 = vector.load %arg5[%c0_12, %c0_13] : memref<16x128xf32, #tpu.memory_space<vmem>>, vector<16x128xf32>
    tpu.vector_store %arg5[%c0_12, %c0_13], %31 {strides = array<i32>} : memref<16x128xf32, #tpu.memory_space<vmem>>, vector<16x128xf32>,
    return
  }
  func.func @transform_0(%arg0: i32) -> (i32, i32) {
    %c0_i32 = arith.constant 0 : i32
    %c0_i32_0 = arith.constant 0 : i32
    return %arg0, %c0_i32 : i32, i32
  }
  func.func @transform_1(%arg0: i32) -> (i32, i32) {
    %c0_i32 = arith.constant 0 : i32
    %c0_i32_0 = arith.constant 0 : i32
    %c0_i32_1 = arith.constant 0 : i32
    return %c0_i32, %c0_i32_0 : i32, i32
  }
  func.func @transform_2(%arg0: i32) -> (i32, i32) {
    %c0_i32 = arith.constant 0 : i32
    %c0_i32_0 = arith.constant 0 : i32
    %c0_i32_1 = arith.constant 0 : i32
    return %c0_i32, %c0_i32_0 : i32, i32
  }
  func.func @transform_3(%arg0: i32) -> (i32, i32) {
    %c0_i32 = arith.constant 0 : i32
    %c0_i32_0 = arith.constant 0 : i32
    %c0_i32_1 = arith.constant 0 : i32
    return %c0_i32, %c0_i32_0 : i32, i32
  }
  func.func @transform_4(%arg0: i32) -> (i32, i32) {
    %c0_i32 = arith.constant 0 : i32
    %c0_i32_0 = arith.constant 0 : i32
    return %arg0, %c0_i32 : i32, i32
  }
}

module attributes {stable_mosaic.version = 11 : i64} {
  func.func @_ln_matmul_kernel(%arg0: i32, %arg1: memref<2x128xf32, #tpu.memory_space<vmem>>, %arg2: memref<1x128xf32, #tpu.memory_space<vmem>>, %arg3: memref<128x128xf32, #tpu.memory_space<vmem>>, %arg4: memref<2x128xf32, #tpu.memory_space<vmem>>) attributes {dimension_semantics = [#tpu.dimension_semantics<parallel>], iteration_bounds = array<i64: 1>, scalar_prefetch = 0 : i64, scratch_operands = 0 : i64, tpu.core_type = #tpu.core_type<tc>, window_params = [{transform_indices = @transform_0, window_bounds = array<i64: 2, 128>}, {pipeline_mode = #tpu.pipeline_mode<synchronous>, transform_indices = @transform_1, window_bounds = array<i64: 1, 128>}, {pipeline_mode = #tpu.pipeline_mode<synchronous>, transform_indices = @transform_2, window_bounds = array<i64: 128, 128>}, {transform_indices = @transform_3, window_bounds = array<i64: 2, 128>}]} {
    %c0 = arith.constant 0 : index
    %c0_0 = arith.constant 0 : index
    %0 = vector.load %arg1[%c0, %c0_0] : memref<2x128xf32, #tpu.memory_space<vmem>>, vector<2x128xf32>
    %1 = arith.mulf %0, %0 : vector<2x128xf32>
    %cst = arith.constant dense<0.000000e+00> : vector<2xf32>
    %2 = vector.multi_reduction <add>, %1, %cst [1] : vector<2x128xf32> to vector<2xf32>
    %3 = vector.shape_cast %2 : vector<2xf32> to vector<2x1xf32>
    %cst_1 = arith.constant 1.280000e+02 : f32
    %4 = vector.broadcast %cst_1 : f32 to vector<2x1xf32>
    %5 = arith.divf %3, %4 : vector<2x1xf32>
    %cst_2 = arith.constant 9.99999974E-6 : f32
    %6 = vector.broadcast %cst_2 : f32 to vector<2x1xf32>
    %7 = arith.addf %5, %6 : vector<2x1xf32>
    %8 = math.rsqrt %7 : vector<2x1xf32>
    %9 = vector.broadcast %8 : vector<2x1xf32> to vector<2x128xf32>
    %10 = arith.mulf %0, %9 : vector<2x128xf32>
    %c0_3 = arith.constant 0 : index
    %c0_4 = arith.constant 0 : index
    %11 = vector.load %arg2[%c0_3, %c0_4] : memref<1x128xf32, #tpu.memory_space<vmem>>, vector<1x128xf32>
    %12 = vector.broadcast %11 : vector<1x128xf32> to vector<2x128xf32>
    %13 = arith.mulf %10, %12 : vector<2x128xf32>
    %14 = arith.truncf %13 : vector<2x128xf32> to vector<2x128xbf16>
    %c0_5 = arith.constant 0 : index
    %c0_6 = arith.constant 0 : index
    %15 = vector.load %arg3[%c0_5, %c0_6] : memref<128x128xf32, #tpu.memory_space<vmem>>, vector<128x128xf32>
    %16 = arith.truncf %15 : vector<128x128xf32> to vector<128x128xbf16>
    %cst_7 = arith.constant dense<0.000000e+00> : vector<2x128xf32>
    %17 = tpu.matmul %14, %16, %cst_7 {dimension_numbers = #tpu.dot_dimension_numbers<[1], [0], [0], [1], [0, 0, 1, 1], [], []>} : vector<2x128xbf16>, vector<128x128xbf16>, vector<2x128xf32> -> vector<2x128xf32>
    %c0_8 = arith.constant 0 : index
    %c0_9 = arith.constant 0 : index
    %18 = vector.load %arg4[%c0_8, %c0_9] : memref<2x128xf32, #tpu.memory_space<vmem>>, vector<2x128xf32>
    tpu.vector_store %arg4[%c0_8, %c0_9], %17 {strides = array<i32>} : memref<2x128xf32, #tpu.memory_space<vmem>>, vector<2x128xf32>,
    return
  }
  func.func @transform_0(%arg0: i32) -> (i32, i32) {
    %c0_i32 = arith.constant 0 : i32
    %c0_i32_0 = arith.constant 0 : i32
    return %arg0, %c0_i32 : i32, i32
  }
  func.func @transform_1(%arg0: i32) -> (i32, i32) {
    %c0_i32 = arith.constant 0 : i32
    %c0_i32_0 = arith.constant 0 : i32
    %c0_i32_1 = arith.constant 0 : i32
    return %c0_i32, %c0_i32_0 : i32, i32
  }
  func.func @transform_2(%arg0: i32) -> (i32, i32) {
    %c0_i32 = arith.constant 0 : i32
    %c0_i32_0 = arith.constant 0 : i32
    %c0_i32_1 = arith.constant 0 : i32
    return %c0_i32, %c0_i32_0 : i32, i32
  }
  func.func @transform_3(%arg0: i32) -> (i32, i32) {
    %c0_i32 = arith.constant 0 : i32
    %c0_i32_0 = arith.constant 0 : i32
    return %arg0, %c0_i32 : i32, i32
  }
}

</mosaic_0001>

<bundles_post_ra>
// kernel: forward.7
= control target key start
LH: loop header
LB: loop body
LE: loop exit
PB: predicated region body
PF: predicated region fallthrough
CT: control target
= control target key end

     0   :  { %v162_v41 = vmov 0   ;;  %s318_s0 = inlined_call_operand.vmem [shape: f32[16,128], index: 0, kind: input, shape index: {}]   ;;  %s319_s2 = inlined_call_operand.vmem [shape: f32[128,256], index: 2, kind: input, shape index: {}]   ;;  %s320_s1 = inlined_call_operand.vmem [shape: f32[1,128], index: 1, kind: input, shape index: {}]   ;;  %s321_s3 = inlined_call_operand.vmem [shape: f32[1,256], index: 3, kind: input, shape index: {}]   ;;  %s322_s4 = inlined_call_operand.vmem [shape: f32[16,256], index: 4, kind: output, shape index: {}]  }
   0x1   :  { %v191_v0 = vld [vmem:[%s318_s0] sm:$0xff]  ;;  %v196_v1 = vld [vmem:[%s318_s0 + $0x8] sm:$0xff]  ;;  %v48_v4 = vld [vmem:[%s319_s2 + $0x18] sm:$0xff]  ;;  %137 = vmatprep.mubr.bf16.mxu0 %v162_v41 }
   0x2   :  { %v46_v2 = vld [vmem:[%s319_s2 + $0x8] sm:$0xff]  ;;  %v20_v3 = vmul.f32 %v191_v0, %v191_v0  ;;  %v45_v5 = vld [vmem:[%s319_s2] sm:$0xff]  ;;  %v47_v6 = vld [vmem:[%s319_s2 + $0x10] sm:$0xff]  ;;  %v21_v12 = vmul.f32 %v196_v1, %v196_v1 }
   0x3   :  { %v78_v7 = vpack.c.bf16 %v48_v4, %v46_v2  ;;  %v77_v8 = vpack.c.bf16 %v47_v6, %v45_v5  ;;  %v50_v9 = vld [vmem:[%s319_s2 + $0x28] sm:$0xff]  ;;  %v52_v10 = vld [vmem:[%s319_s2 + $0x38] sm:$0xff]  ;;  %v49_v11 = vld [vmem:[%s319_s2 + $0x20] sm:$0xff]  ;;  %v95_v5 = vlaneseq }
   0x4   :  { %22 = vadd.xlane.f32.xlu0 %v20_v3  ;;  %v80_v13 = vpack.c.bf16 %v52_v10, %v50_v9  ;;  %v51_v14 = vld [vmem:[%s319_s2 + $0x30] sm:$0xff]  ;;  %v54_v16 = vld [vmem:[%s319_s2 + $0x48] sm:$0xff]  ;;  %v56_v17 = vld [vmem:[%s319_s2 + $0x58] sm:$0xff] }
   0x5   :  { %105 = vmatprep.subr.bf16.mxu0 %v78_v7  ;;  %v79_v15 = vpack.c.bf16 %v51_v14, %v49_v11  ;;  %v82_v18 = vpack.c.bf16 %v56_v17, %v54_v16  ;;  %v53_v19 = vld [vmem:[%s319_s2 + $0x40] sm:$0xff]  ;;  %v55_v20 = vld [vmem:[%s319_s2 + $0x50] sm:$0xff]  ;;  %v58_v22 = vld [vmem:[%s319_s2 + $0x68] sm:$0xff]  ;;  %v96_v6 = vshrl.u32 %v95_v5, 7 }
   0x6   :  { %106 = vmatpush1.bf16.msra.mxu0 %v77_v8  ;;  %v81_v21 = vpack.c.bf16 %v55_v20, %v53_v19  ;;  %v60_v23 = vld [vmem:[%s319_s2 + $0x78] sm:$0xff]  ;;  %v57_v25 = vld [vmem:[%s319_s2 + $0x60] sm:$0xff]  ;;  %v59_v26 = vld [vmem:[%s319_s2 + $0x70] sm:$0xff] }
   0x7   :  { %107 = vmatprep.subr.bf16.mxu0 %v80_v13  ;;  %v84_v24 = vpack.c.bf16 %v60_v23, %v58_v22  ;;  %v83_v27 = vpack.c.bf16 %v59_v26, %v57_v25  ;;  %v62_v28 = vld [vmem:[%s319_s2 + $0x88] sm:$0xff]  ;;  %v64_v29 = vld [vmem:[%s319_s2 + $0x98] sm:$0xff]  ;;  %v61_v31 = vld [vmem:[%s319_s2 + $0x80] sm:$0xff]  ;;  %v97_v7 = vsub.s32 0, %v96_v6  ;;  %v101_v9 = vsub.s32 1, %v96_v6 }
   0x8   :  { %24 = vadd.xlane.f32.xlu0 %v21_v12  ;;  %v86_v30 = vpack.c.bf16 %v64_v29, %v62_v28  ;;  %v63_v32 = vld [vmem:[%s319_s2 + $0x90] sm:$0xff]  ;;  %v66_v34 = vld [vmem:[%s319_s2 + $0xa8] sm:$0xff]  ;;  %v68_v35 = vld [vmem:[%s319_s2 + $0xb8] sm:$0xff] }
   0x9   :  { %v85_v33 = vpack.c.bf16 %v63_v32, %v61_v31  ;;  %v65_v36 = vld [vmem:[%s319_s2 + $0xa0] sm:$0xff]  ;;  %v88_v37 = vpack.c.bf16 %v68_v35, %v66_v34  ;;  %v67_v38 = vld [vmem:[%s319_s2 + $0xb0] sm:$0xff]  ;;  %v70_v39 = vld [vmem:[%s319_s2 + $0xc8] sm:$0xff] }
   0xa   :  { %108 = vmatpush1.bf16.msra.mxu0 %v79_v15  ;;  %v72_v40 = vld [vmem:[%s319_s2 + $0xd8] sm:$0xff]  ;;  %v87_v42 = vpack.c.bf16 %v67_v38, %v65_v36  ;;  %v69_v44 = vld [vmem:[%s319_s2 + $0xc0] sm:$0xff]  ;;  %v71_v45 = vld [vmem:[%s319_s2 + $0xd0] sm:$0xff] }
   0xb   :  { %109 = vmatprep.subr.bf16.mxu0 %v82_v18  ;;  %v90_v43 = vpack.c.bf16 %v72_v40, %v70_v39  ;;  %v74_v46 = vld [vmem:[%s319_s2 + $0xe8] sm:$0xff]  ;;  %v76_v47 = vld [vmem:[%s319_s2 + $0xf8] sm:$0xff]  ;;  %v89_v48 = vpack.c.bf16 %v71_v45, %v69_v44  ;;  %v73_v50 = vld [vmem:[%s319_s2 + $0xe0] sm:$0xff] }
   0xc   :  { %v92_v49 = vpack.c.bf16 %v76_v47, %v74_v46  ;;  %v75_v51 = vld [vmem:[%s319_s2 + $0xf0] sm:$0xff]  ;;  %v156_v62 = vld [vmem:[%s320_s1] ss:$0 sm:$0xff] }
   0xd   :  { %v91_v52 = vpack.c.bf16 %v75_v51, %v73_v50  ;;  %v93_v8 = vld [vmem:[%s321_s3] sm:$0x3] }
   0xe   :  { %110 = vmatpush1.bf16.msra.mxu0 %v81_v21  ;;  %v102_v10 = vrot.slane %v93_v8, %v101_v9 }
   0xf   :  { %111 = vmatprep.subr.bf16.mxu0 %v84_v24 }
  0x12   :  { %112 = vmatpush1.bf16.msra.mxu0 %v83_v27 }
  0x13   :  { %113 = vmatprep.subr.bf16.mxu0 %v86_v30 }
  0x16   :  { %114 = vmatpush1.bf16.msra.mxu0 %v85_v33 }
  0x17   :  { %115 = vmatprep.subr.bf16.mxu0 %v88_v37 }
  0x1a   :  { %116 = vmatpush1.bf16.msra.mxu0 %v87_v42 }
  0x1b   :  { %117 = vmatprep.subr.bf16.mxu0 %v90_v43 }
  0x1e   :  { %118 = vmatpush1.bf16.msra.mxu0 %v89_v48 }
  0x1f   :  { %119 = vmatprep.subr.bf16.mxu0 %v92_v49 }
  0x22   :  { %120 = vmatpush1.bf16.msra.mxu0 %v91_v52 }
  0x91   :  { %v23_v53 = vpop.xlane.xlu0 %22 }
  0x92   :  { %v27_v54 = vmul.f32 0.0078125, %v23_v53 }
  0x94   :  { %v29_v55 = vadd.f32 1e-05, %v27_v54 }
  0x95   :  { %v25_v56 = vpop.xlane.xlu0 %24 }
  0x96   :  { %158 = vrsqrt.f32 %v29_v55  ;;  %v28_v57 = vmul.f32 0.0078125, %v25_v56 }
  0x98   :  { %v30_v58 = vadd.f32 1e-05, %v28_v57 }
  0x9a   :  { %160 = vrsqrt.f32 %v30_v58 }
  0xa0   :  { %v159_v59 = vpop.eup %158 }
  0xa1   :  { %v33_v60 = vmul.f32 %v159_v59, %v191_v0  ;;  %v98_v0 = vrot.slane %v93_v8, %v97_v7 }
  0xa3   :  { %v42_v2 = vmul.f32 %v156_v62, %v33_v60 }
  0xa4   :  { %v161_v61 = vpop.eup %160 }
  0xa5   :  { %v34_v63 = vmul.f32 %v161_v61, %v196_v1 }
  0xa7   :  { %v43_v3 = vmul.f32 %v156_v62, %v34_v63 }
  0xa9   :  { %v44_v4 = vpack.c.bf16 %v43_v3, %v42_v2 }
  0xab   :  { %138 = vmatmul.mubr.bf16.vlgmr.msra.gmra.mrb[0].mxu0 %v44_v4 }
 0x17e   :  { %v139_v11 = vpop.f32.mrb[0].mxu0 }
 0x17f   :  { %v140_v12 = vadd.f32 %v139_v11, %v98_v0  ;;  %v141_v13 = vpop.f32.mrb[1].mxu0 }
 0x180   :  { %v142_v14 = vadd.f32 %v141_v13, %v102_v10  ;;  %v143_v15 = vpop.f32.mrb[2].mxu0 }
 0x181   :  { %148 = vst [vmem:[%s322_s4] sm:$0xff] %v140_v12  ;;  %v144_v1 = vadd.f32 %v143_v15, %v98_v0  ;;  %v145_v16 = vpop.f32.mrb[3].mxu0 }
 0x182   :  { %149 = vst [vmem:[%s322_s4 + $0x8] sm:$0xff] %v142_v14  ;;  %v146_v17 = vadd.f32 %v145_v16, %v102_v10 }
 0x183   :  { %150 = vst [vmem:[%s322_s4 + $0x10] sm:$0xff] %v144_v1 }
 0x184   :  { %151 = vst [vmem:[%s322_s4 + $0x18] sm:$0xff] %v146_v17 }

// kernel: forward.13
= control target key start
LH: loop header
LB: loop body
LE: loop exit
PB: predicated region body
PF: predicated region fallthrough
CT: control target
= control target key end

     0   :  { %vm18_vm0 = vcmask 1041408   ;;  %v174_v4 = vmov 0.0   ;;  %s263_s0 = inlined_call_operand.vmem [shape: f32[2,128], index: 0, kind: input, shape index: {}]   ;;  %s264_s1 = inlined_call_operand.vmem [shape: f32[1,128], index: 1, kind: input, shape index: {}]   ;;  %s265_s2 = inlined_call_operand.vmem [shape: f32[128,128], index: 2, kind: input, shape index: {}]   ;;  %s266_s3 = inlined_call_operand.hbm [shape: f32[2,128], index: 3, kind: output, shape index: {}]  }
   0x1   :  { %v16_v0 = vld [vmem:[%s263_s0] sm:$0x3]  ;;  %v37_v2 = vld [vmem:[%s265_s2 + $0x8] sm:$0xff]  ;;  %125 = vmatprep.subr.bf16.mxu0 %v174_v4  ;;  %v38_v6 = vld [vmem:[%s265_s2 + $0x10] sm:$0xff] }
   0x2   :  { %v36_v1 = vld [vmem:[%s265_s2] sm:$0xff]  ;;  %v17_v3 = vmul.f32 %v16_v0, %v16_v0  ;;  %v39_v7 = vld [vmem:[%s265_s2 + $0x18] sm:$0xff] }
   0x3   :  { %v52_v5 = vpack.c.bf16 %v37_v2, %v36_v1 }
   0x4   :  { %8 = vsyncpa [#allocation3], 0  ;;  %v19_v8 = vsel %vm18_vm0, %v17_v3, 0.0  ;;  %v53_v9 = vpack.c.bf16 %v39_v7, %v38_v6  ;;  %v40_v10 = vld [vmem:[%s265_s2 + $0x20] sm:$0xff]  ;;  %v41_v11 = vld [vmem:[%s265_s2 + $0x28] sm:$0xff]  ;;  %vm175_vm1 = vmmov 0  }
   0x5   :  { %126 = vmatpush3.bf16.msra.mxu0 %v52_v5  ;;  %20 = vadd.xlane.f32.xlu0 %v19_v8  ;;  %v54_v12 = vpack.c.bf16 %v41_v11, %v40_v10  ;;  %v42_v13 = vld [vmem:[%s265_s2 + $0x30] sm:$0xff]  ;;  %v43_v14 = vld [vmem:[%s265_s2 + $0x38] sm:$0xff]  ;;  %v44_v16 = vld [vmem:[%s265_s2 + $0x40] sm:$0xff]  ;;  %s176_s20 = smov [#allocation2]  }
   0x6   :  { %127 = vmatprep.subr.bf16.mxu0 %v174_v4  ;;  %v55_v15 = vpack.c.bf16 %v43_v14, %v42_v13  ;;  %v45_v17 = vld [vmem:[%s265_s2 + $0x48] sm:$0xff]  ;;  %v46_v19 = vld [vmem:[%s265_s2 + $0x50] sm:$0xff]  ;;  %v47_v20 = vld [vmem:[%s265_s2 + $0x58] sm:$0xff]  ;;  %141 = vmatprep.mubr.msk.bf16.mxu0 %vm175_vm1, %v174_v4  ;;  %s107_s21 = sshll.u32 %s176_s20, 4  ;;  %s108_s21 = int_to_ptr.vmem [resolvable:$true] %s107_s21 }
   0x7   :  { %v56_v18 = vpack.c.bf16 %v45_v17, %v44_v16  ;;  %v57_v21 = vpack.c.bf16 %v47_v20, %v46_v19  ;;  %v48_v22 = vld [vmem:[%s265_s2 + $0x60] sm:$0xff]  ;;  %v49_v23 = vld [vmem:[%s265_s2 + $0x68] sm:$0xff]  ;;  %v50_v25 = vld [vmem:[%s265_s2 + $0x70] sm:$0xff]  ;;  %p155_p1 = scmp.lt.s32.totalorder %s108_s21, %s108_s21 }
   0x8   :  { %v58_v24 = vpack.c.bf16 %v49_v23, %v48_v22  ;;  %v51_v26 = vld [vmem:[%s265_s2 + $0x78] sm:$0xff]  ;;  %v115_v32 = vld [vmem:[%s264_s1] ss:$0 sm:$0xff]  ;;  %s150_s2 = scalar_lea.vmem %s108_s21, 32 }
   0x9   :  { %128 = vmatpush3.bf16.msra.mxu0 %v53_v9  ;;  %v59_v27 = vpack.c.bf16 %v51_v26, %v50_v25  ;;  %p151_p0 = scmp.ne.s32.totalorder %s108_s21, %s150_s2  ;;  %p156_p2 = scmp.lt.s32.totalorder %s150_s2, %s150_s2 }
   0xa   :  { %129 = vmatprep.subr.bf16.mxu0 %v174_v4 }
   0xb   :  { %p157_p3 = por %p156_p2, %p155_p1 }
   0xd   :  { %130 = vmatpush3.bf16.msra.mxu0 %v54_v12  ;;  %p158_p4 = pnand %p157_p3, %p151_p0 }
   0xe   :  { %131 = vmatprep.subr.bf16.mxu0 %v174_v4 }
  0x11   :  { %132 = vmatpush3.bf16.msra.mxu0 %v55_v15 }
  0x12   :  { %133 = vmatprep.subr.bf16.mxu0 %v174_v4 }
  0x15   :  { %134 = vmatpush3.bf16.msra.mxu0 %v56_v18 }
  0x16   :  { %135 = vmatprep.subr.bf16.mxu0 %v174_v4 }
  0x19   :  { %136 = vmatpush3.bf16.msra.mxu0 %v57_v21 }
  0x1a   :  { %137 = vmatprep.subr.bf16.mxu0 %v174_v4 }
  0x1d   :  { %138 = vmatpush3.bf16.msra.mxu0 %v58_v24 }
  0x1e   :  { %139 = vmatprep.subr.bf16.mxu0 %v174_v4 }
  0x21   :  { %140 = vmatpush3.bf16.msra.mxu0 %v59_v27 }
  0x92   :  { %v21_v28 = vpop.xlane.xlu0 %20 }
  0x93   :  { %v23_v29 = vmul.f32 0.0078125, %v21_v28 }
  0x95   :  { %v24_v30 = vadd.f32 1e-05, %v23_v29 }
  0x97   :  { %148 = vrsqrt.f32 %v24_v30 }
  0xa1   :  { %v149_v31 = vpop.eup %148 }
  0xa2   :  { %v26_v33 = vmul.f32 %v149_v31, %v16_v0 }
  0xa4   :  { %v34_v34 = vmul.f32 %v115_v32, %v26_v33 }
  0xa6   :  { %v35_v35 = vpack.c.bf16 %v34_v34, %v34_v34 }
  0xa8   :  { %142 = vmatmul.mubr.bf16.vlgmr.msra.gmra.mrb[0].mxu0 %v35_v35 }
 0x17b   :  { %v94_v36 = vpop.f32.mrb[0].mxu0 }
 0x17c   :  { %100 = vst [vmem:[#allocation2] sm:$0x3] %v94_v36  ;;  %v143_v37 = vpop.f32.mrb[1].mxu0 }
 0x17d   :  { %v97_v38 = vpop.f32.mrb[2].mxu0 }
 0x17e   :  { %161 = shalt.err (!%p158_p4)
}
 0x17f   :  { %s162_s22 = scalar_lea.hbm %s266_s3, 32 }
 0x180   :  { %p163_p5 = scmp.ne.s32.totalorder %s266_s3, %s162_s22  ;;  %p166_p6 = scmp.lt.u32.totalorder %s162_s22, %s266_s3 }
 0x182   :  { %p168_p7 = pnand %p166_p6, %p163_p5 }
 0x184   :  { %171 = shalt.err (!%p168_p7)
}
 0x185   :  { %110 = dma.vmem_to_hbm [thread:$0]  %s108_s21, 32, %s266_s3, [#allocation3]   ;;  %v144_v39 = vpop.f32.mrb[3].mxu0 }
 0x186   :  { %172 = dma.done.wait [#allocation3], 32  }
 0x187   :  { %173 = vsyncadd [#allocation3], 4294967264 }
 0x188   :  { %114 = vsyncpa [#allocation3], 1 }

// kernel: forward.8
= control target key start
LH: loop header
LB: loop body
LE: loop exit
PB: predicated region body
PF: predicated region fallthrough
CT: control target
= control target key end

     0   :  { %s1139_s21 = smov 0   ;;  %s1299_s0 = inlined_call_operand.vmem [shape: f32[2,1,8], index: 0, kind: input, shape index: {}]   ;;  %s1300_s1 = inlined_call_operand.vmem [shape: f32[2,8,128], index: 1, kind: input, shape index: {}]   ;;  %s1301_s2 = inlined_call_operand.vmem [shape: f32[2,8,128], index: 2, kind: input, shape index: {}]   ;;  %s1302_s3 = inlined_call_operand.vmem [shape: f32[2,8,64], index: 3, kind: input, shape index: {}]   ;;  %s1303_s4 = inlined_call_operand.vmem [shape: f32[2,8,64], index: 4, kind: input, shape index: {}]   ;;  %s1304_s5 = inlined_call_operand.vmem [shape: f32[128,128], index: 5, kind: input, shape index: {}]   ;;  %s1305_s6 = inlined_call_operand.vmem [shape: f32[2,8,128], index: 6, kind: output, shape index: {}]  }
   0x1 LB: > { %s945_s22 = sadd.s32 4294967295, %s1095_s21   ;;  %p949_p0 = scmp.ge.s32.totalorder %s1095_s21, 1  ;;  %s1095_s21 = sphi %s1139_s21, %s16_s21  }
   0x2   : > { %p246_p1 = scmp.lt.s32.totalorder %s1095_s21, 3 }
   0x4   : > { %p247_p2 = pnand %p949_p0, %p246_p1 }
   0x5   : > { %p289_p3 = scmp.lt.s32.totalorder (!%p247_p2), %s945_s22, 1  ;;  %v1097_v0 = vmov (!%p247_p2), 0.0   ;;  %vm1098_vm0 = vmmov (!%p247_p2), 0   ;;  %vm334_vm1 = vcmask (!%p247_p2), 261120   ;;  %v320_v6 = vlaneseq (!%p247_p2)  ;;  %s1101_s9 = smov (!%p247_p2), 96  }
   0x6   : > { %250 = sbr.rel (%p247_p2) target bundleno = 1660 (0x67c), region = 44  ;;  %990 = vmatprep.subr.bf16.mxu0 (!%p247_p2), %v1097_v0  ;;  %992 = vmatprep.mubr.msk.bf16.mxu0 (!%p247_p2), %vm1098_vm0, %v1097_v0  ;;  %v1099_v10 = vmov (!%p247_p2), 0   ;;  %v1100_v15 = vmov (!%p247_p2), -1e+09   ;;  %vm383_vm6 = vcmask (!%p247_p2), 64512   ;;  %s1102_s10 = smov (!%p247_p2), 32  }
   0x7   : > { %1014 = vmatprep.subr.bf16.mxu1 (!%p247_p2), %v1097_v0  ;;  %1016 = vmatprep.mubr.msk.bf16.mxu1 (!%p247_p2), %vm1098_vm0, %v1097_v0  ;;  %v321_v8 = vshrl.u32 (!%p247_p2), %v320_v6, 7  ;;  %v323_v12 = vand.u32 (!%p247_p2), 127, %v320_v6  ;;  %vm399_vm7 = vcmask (!%p247_p2), 1043456   ;;  %s1103_s14 = smov (!%p247_p2), 64   ;;  %vm775_vm8 = vcmask (!%p247_p2), 523264  }
   0x8   : > { %vm777_vm9 = vcmask (!%p247_p2), 785408  }
   0x9   : > { %v329_v9 = vsub.s32 (!%p247_p2), 0, %v321_v8  ;;  %vm324_vm3 = vcmp.le.s32.totalorder (!%p247_p2), %v323_v12, %v321_v8 }
   0xd   : > { %s1307_s22 = smov (!%p289_p3, %s945_s22), 1 }
   0xe   : > { %s1153_s23 = sshll.u32 %s1307_s22, 3  ;;  %s291_s8 = scalar_lea.vmem %s1299_s0, %s1307_s22 }
   0xf   : > { %s303_s26 = scalar_lea.vmem %s1302_s3, %s1153_s23  ;;  %s299_s29 = scalar_lea.vmem %s1301_s2, %s1153_s23  ;;  %v319_v7 = vld [vmem:[%s291_s8] sm:$0x1] }
  0x10   : > { %v315_v1 = vld [vmem:[%s303_s26] sm:$0xff]  ;;  %vm325_vm2 = vcmp.gt.f32.partialorder %v319_v7, 0.5  ;;  %s307_s13 = scalar_lea.vmem %s1303_s4, %s1153_s23  ;;  %s311_s8 = scalar_lea.vmem %s1305_s6, %s1153_s23 }
  0x11   : > { %v316_v2 = vpack.c.bf16 %v315_v1, %v315_v1  ;;  %v313_v4 = vld [vmem:[%s299_s29] sm:$0xff]  ;;  %v326_v11 = vsel %vm325_vm2, 1, %v1099_v10 }
  0x12   : > { %v314_v5 = vpack.c.bf16 %v313_v4, %v313_v4  ;;  %v330_v13 = vrot.slane %v326_v11, %v329_v9  ;;  %v317_v31 = vld [vmem:[%s307_s13] sm:$0xff] }
  0x13   : > { %v1164_v3 = vsel %vm334_vm1, %v316_v2, 0  ;;  %v318_v32 = vpack.c.bf16 %v317_v31, %v317_v31  ;;  %v781_v31 = vld [vmem:[%s1304_s5] sm:$0xff] }
  0x14   : > { %991 = vmatpush3.bf16.xpose.msra.mxu0 %v1164_v3  ;;  %vm331_vm4 = vcmp.eq.s32.totalorder %v330_v13, 1  ;;  %444 = vrot.lane.b32.xlu1 %v314_v5, %s1101_s9 }
  0x15   : > { %996 = vmatprep.subr.bf16.mxu0 %v1097_v0  ;;  %vm332_vm5 = vmand %vm324_vm3, %vm331_vm4  ;;  %v401_v33 = vsel %vm399_vm7, %v318_v32, 0 }
  0x16   : > { %v1174_v16 = vsel %vm332_vm5, 0.0, %v1100_v15 }
  0x18   : > { %549 = vrot.lane.b32.xlu1 %v316_v2, %s1101_s9 }
  0x1b   : > { %993 = vmatmul.mubr.msk.bf16.vlgmr.msra.gmra.mrb[0].mxu0 %vm334_vm1, %v314_v5 }
  0x1c   : > { %998 = vmatprep.mubr.msk.bf16.mxu0 %vm1098_vm0, %v1097_v0  ;;  %660 = vrot.lane.b32.xlu1 %v314_v5, %s1102_s10 }
  0x1d   : > { %997 = vmatpush3.bf16.msra.mxu0 %v401_v33 }
  0x1e   : > { %1002 = vmatprep.subr.bf16.mxu0 %v1097_v0 }
  0x86   : > { %v445_v26 = vpop.permute.xlu1 %444 }
  0x8a   : > { %v550_v27 = vpop.permute.xlu1 %549 }
  0x8b   : > { %v555_v28 = vsel %vm334_vm1, %v550_v27, 0 }
  0x8c   : > { %1015 = vmatpush3.bf16.xpose.msra.mxu1 %v555_v28 }
  0x8d   : > { %1026 = vmatprep.subr.bf16.mxu1 %v1097_v0 }
  0x8e   : > { %v661_v36 = vpop.permute.xlu1 %660 }
  0xee   : > { %v375_v14 = vpop.f32.mrb[0].mxu0 }
  0xef   : > { %v381_v17 = vmul.f32 0.17677669, %v375_v14  ;;  %v994_v18 = vpop.f32.mrb[1].mxu0 }
  0xf0   : > { %v378_v19 = vpop.f32.mrb[2].mxu0 }
  0xf1   : > { %v995_v20 = vpop.f32.mrb[3].mxu0  ;;  %v382_v21 = vadd.f32 %v381_v17, %v1174_v16 }
  0xf3   : > { %v384_v22 = vsel %vm383_vm6, %v382_v21, -inf }
  0xf4   : > { %385 = vmax.xlane.f32.xlu0 %v384_v22 }
 0x181   : > { %v386_v23 = vpop.xlane.xlu0 %385 }
 0x182   : > { %v387_v24 = vsub.f32 %v382_v21, %v386_v23 }
 0x184   : > { %v388_v25 = vmul.f32 1.442695, %v387_v24 }
 0x186   : > { %1073 = vpow2.f32 %v388_v25 }
 0x190   : > { %v1074_v29 = vpop.eup %1073 }
 0x191   : > { %v390_v30 = vsel %vm383_vm6, %v1074_v29, 0.0 }
 0x192   : > { %391 = vadd.xlane.f32.xlu0 %v390_v30 }
 0x1a8   : > { %546 = vrot.lane.b32.xlu0 %v314_v5, %s1103_s14 }
 0x21f   : > { %v392_v34 = vpop.xlane.xlu0 %391 }
 0x220   : > { %1075 = vrcp.f32 %v392_v34 }
 0x223   : > { %v547_v35 = vpop.permute.xlu0 %546 }
 0x224   : > { %1017 = vmatmul.mubr.msk.bf16.vlgmr.msra.gmra.mrb[0].mxu1 %vm334_vm1, %v547_v35  ;;  %v784_v35 = vld [vmem:[%s1304_s5 + $0x18] sm:$0xff] }
 0x225   : > { %1027 = vmatpush3.bf16.xpose.msra.mxu1 %v555_v28  ;;  %1028 = vmatprep.mubr.msk.bf16.mxu1 %vm1098_vm0, %v1097_v0 }
 0x226   : > { %1038 = vmatprep.subr.bf16.mxu1 %v1097_v0 }
 0x22a   : > { %v1076_v37 = vpop.eup %1075 }
 0x22b   : > { %v394_v38 = vmul.f32 %v1076_v37, %v1074_v29  ;;  %v785_v37 = vld [vmem:[%s1304_s5 + $0x20] sm:$0xff] }
 0x22c   : > { %1029 = vmatmul.mubr.msk.bf16.vlgmr.msra.gmra.mrb[4].mxu1 %vm334_vm1, %v661_v36 }
 0x22d   : > { %v395_v39 = vpack.c.bf16 %v394_v38, %v394_v38  ;;  %1054 = vmatprep.mubr.msk.bf16.mxu1 %vm1098_vm0, %v1097_v0  ;;  %v786_v38 = vld [vmem:[%s1304_s5 + $0x28] sm:$0xff] }
 0x22f   : > { %999 = vmatmul.mubr.msk.bf16.vlgmr.msra.gmra.mrb[4].mxu0 %vm383_vm6, %v395_v39  ;;  %v799_v39 = vpack.c.bf16 %v786_v38, %v785_v37 }
 0x230   : > { %1003 = vmatpush3.bf16.xpose.msra.mxu0 %v1164_v3  ;;  %1004 = vmatprep.mubr.msk.bf16.mxu0 %vm1098_vm0, %v1097_v0 }
 0x231   : > { %1008 = vmatprep.subr.bf16.mxu0 %v1097_v0 }
 0x237   : > { %1005 = vmatmul.mubr.msk.bf16.vlgmr.msra.gmra.mrb[8].mxu0 %vm334_vm1, %v445_v26 }
 0x238   : > { %1009 = vmatpush3.bf16.msra.mxu0 %v401_v33  ;;  %1010 = vmatprep.mubr.msk.bf16.mxu0 %vm1098_vm0, %v1097_v0  ;;  %v783_v33 = vld [vmem:[%s1304_s5 + $0x10] sm:$0xff] }
 0x239   : > { %1020 = vmatprep.subr.bf16.mxu0 %v1097_v0  ;;  %v798_v36 = vpack.c.bf16 %v784_v35, %v783_v33 }
 0x2f7   : > { %v591_v40 = vpop.f32.mrb[0].mxu1 }
 0x2f8   : > { %v597_v41 = vmul.f32 0.17677669, %v591_v40  ;;  %v1018_v42 = vpop.f32.mrb[1].mxu1  ;;  %v787_v40 = vld [vmem:[%s1304_s5 + $0x30] sm:$0xff] }
 0x2f9   : > { %v594_v43 = vpop.f32.mrb[2].mxu1 }
 0x2fa   : > { %v598_v44 = vadd.f32 %v597_v41, %v1174_v16  ;;  %v1019_v45 = vpop.f32.mrb[3].mxu1  ;;  %v788_v41 = vld [vmem:[%s1304_s5 + $0x38] sm:$0xff]  ;;  %v789_v43 = vld [vmem:[%s1304_s5 + $0x40] sm:$0xff] }
 0x2fb   : > { %v800_v42 = vpack.c.bf16 %v788_v41, %v787_v40 }
 0x2fc   : > { %v599_v46 = vsel %vm383_vm6, %v598_v44, -inf }
 0x2fd   : > { %600 = vmax.xlane.f32.xlu0 %v599_v46  ;;  %v791_v46 = vld [vmem:[%s1304_s5 + $0x50] sm:$0xff] }
 0x2ff   : > { %v699_v47 = vpop.f32.mrb[4].mxu1 }
 0x300   : > { %v1030_v48 = vpop.f32.mrb[5].mxu1  ;;  %v705_v55 = vmul.f32 0.17677669, %v699_v47  ;;  %v792_v47 = vld [vmem:[%s1304_s5 + $0x58] sm:$0xff] }
 0x301   : > { %v702_v49 = vpop.f32.mrb[6].mxu1  ;;  %v802_v48 = vpack.c.bf16 %v792_v47, %v791_v46 }
 0x302   : > { %v1209_v50 = vpop.f32.mrb[4].mxu0  ;;  %v1031_v51 = vpop.f32.mrb[7].mxu1  ;;  %v706_v62 = vadd.f32 %v705_v55, %v1174_v16  ;;  %v793_v49 = vld [vmem:[%s1304_s5 + $0x60] sm:$0xff] }
 0x303   : > { %v1000_v52 = vpop.f32.mrb[5].mxu0  ;;  %v794_v51 = vld [vmem:[%s1304_s5 + $0x68] sm:$0xff] }
 0x304   : > { %v440_v53 = vpop.f32.mrb[6].mxu0  ;;  %v707_v1 = vsel %vm383_vm6, %v706_v62, -inf  ;;  %v803_v52 = vpack.c.bf16 %v794_v51, %v793_v49 }
 0x305   : > { %v1001_v54 = vpop.f32.mrb[7].mxu0 }
 0x30a   : > { %v483_v56 = vpop.f32.mrb[8].mxu0 }
 0x30b   : > { %v489_v57 = vmul.f32 0.17677669, %v483_v56  ;;  %v1006_v58 = vpop.f32.mrb[9].mxu0  ;;  %v795_v56 = vld [vmem:[%s1304_s5 + $0x70] sm:$0xff] }
 0x30c   : > { %v486_v59 = vpop.f32.mrb[10].mxu0 }
 0x30d   : > { %v1007_v60 = vpop.f32.mrb[11].mxu0  ;;  %v490_v61 = vadd.f32 %v489_v57, %v1174_v16  ;;  %v796_v57 = vld [vmem:[%s1304_s5 + $0x78] sm:$0xff] }
 0x30e   : > { %v804_v59 = vpack.c.bf16 %v796_v57, %v795_v56 }
 0x30f   : > { %v491_v63 = vsel %vm383_vm6, %v490_v61, -inf }
 0x310   : > { %492 = vmax.xlane.f32.xlu1 %v491_v63 }
 0x313   : > { %612 = vrot.lane.b32.xlu0 %v318_v32, %s1101_s9  ;;  %v782_v32 = vld [vmem:[%s1304_s5 + $0x8] sm:$0xff] }
 0x314   : > { %708 = vmax.xlane.f32.xlu1 %v707_v1  ;;  %v797_v34 = vpack.c.bf16 %v782_v32, %v781_v31 }
 0x316   : > { %1039 = vmatpush3.bf16.msra.mxu1 %v797_v34 }
 0x317   : > { %1040 = vmatprep.subr.bf16.mxu1 %v1097_v0 }
 0x31a   : > { %1041 = vmatpush3.bf16.msra.mxu1 %v798_v36 }
 0x31b   : > { %1042 = vmatprep.subr.bf16.mxu1 %v1097_v0 }
 0x31e   : > { %1043 = vmatpush3.bf16.msra.mxu1 %v799_v39 }
 0x31f   : > { %1044 = vmatprep.subr.bf16.mxu1 %v1097_v0 }
 0x322   : > { %1045 = vmatpush3.bf16.msra.mxu1 %v800_v42 }
 0x323   : > { %1046 = vmatprep.subr.bf16.mxu1 %v1097_v0 }
 0x38a   : > { %v601_v2 = vpop.xlane.xlu0 %600 }
 0x38b   : > { %v602_v3 = vsub.f32 %v598_v44, %v601_v2  ;;  %v790_v44 = vld [vmem:[%s1304_s5 + $0x48] sm:$0xff] }
 0x38c   : > { %v801_v45 = vpack.c.bf16 %v790_v44, %v789_v43 }
 0x38d   : > { %v603_v6 = vmul.f32 1.442695, %v602_v3 }
 0x38e   : > { %v613_v21 = vpop.permute.xlu0 %612  ;;  %1047 = vmatpush3.bf16.msra.mxu1 %v801_v45 }
 0x38f   : > { %v618_v23 = vsel %vm399_vm7, %v613_v21, 0  ;;  %1048 = vmatprep.subr.bf16.mxu1 %v1097_v0 }
 0x392   : > { %1049 = vmatpush3.bf16.msra.mxu1 %v802_v48 }
 0x393   : > { %1050 = vmatprep.subr.bf16.mxu1 %v1097_v0 }
 0x396   : > { %1051 = vmatpush3.bf16.msra.mxu1 %v803_v52 }
 0x397   : > { %1052 = vmatprep.subr.bf16.mxu1 %v1097_v0 }
 0x39a   : > { %1053 = vmatpush3.bf16.msra.mxu1 %v804_v59 }
 0x39d   : > { %v493_v4 = vpop.xlane.xlu1 %492 }
 0x39e   : > { %v494_v5 = vsub.f32 %v490_v61, %v493_v4 }
 0x3a0   : > { %v495_v7 = vmul.f32 1.442695, %v494_v5 }
 0x3a1   : > { %v709_v8 = vpop.xlane.xlu1 %708 }
 0x3a2   : > { %1077 = vpow2.f32 %v495_v7  ;;  %v710_v9 = vsub.f32 %v706_v62, %v709_v8 }
 0x3a3   : > { %1079 = vpow2.f32 %v603_v6 }
 0x3a4   : > { %v711_v10 = vmul.f32 1.442695, %v710_v9 }
 0x3a6   : > { %1081 = vpow2.f32 %v711_v10 }
 0x3ac   : > { %v1078_v11 = vpop.eup %1077 }
 0x3ad   : > { %v497_v12 = vsel %vm383_vm6, %v1078_v11, 0.0  ;;  %v1080_v13 = vpop.eup %1079 }
 0x3ae   : > { %498 = vadd.xlane.f32.xlu1 %v497_v12  ;;  %v605_v14 = vsel %vm383_vm6, %v1080_v13, 0.0 }
 0x3b0   : > { %v1082_v15 = vpop.eup %1081 }
 0x3b1   : > { %v713_v16 = vsel %vm383_vm6, %v1082_v15, 0.0 }
 0x3b2   : > { %606 = vadd.xlane.f32.xlu1 %v605_v14 }
 0x3b6   : > { %714 = vadd.xlane.f32.xlu1 %v713_v16 }
 0x43b   : > { %v499_v17 = vpop.xlane.xlu1 %498 }
 0x43c   : > { %1083 = vrcp.f32 %v499_v17 }
 0x43f   : > { %v607_v18 = vpop.xlane.xlu1 %606 }
 0x440   : > { %1085 = vrcp.f32 %v607_v18 }
 0x443   : > { %v715_v19 = vpop.xlane.xlu1 %714 }
 0x444   : > { %1087 = vrcp.f32 %v715_v19 }
 0x446   : > { %v1084_v20 = vpop.eup %1083 }
 0x447   : > { %v501_v22 = vmul.f32 %v1084_v20, %v1078_v11 }
 0x449   : > { %v502_v24 = vpack.c.bf16 %v501_v22, %v501_v22 }
 0x44a   : > { %v1086_v25 = vpop.eup %1085 }
 0x44b   : > { %1011 = vmatmul.mubr.msk.bf16.vlgmr.msra.gmra.mrb[12].mxu0 %vm383_vm6, %v502_v24  ;;  %v609_v26 = vmul.f32 %v1086_v25, %v1080_v13 }
 0x44c   : > { %1021 = vmatpush3.bf16.msra.mxu0 %v618_v23  ;;  %1022 = vmatprep.mubr.msk.bf16.mxu0 %vm1098_vm0, %v1097_v0 }
 0x44d   : > { %1032 = vmatprep.subr.bf16.mxu0 %v1097_v0  ;;  %v610_v27 = vpack.c.bf16 %v609_v26, %v609_v26 }
 0x44e   : > { %v1088_v28 = vpop.eup %1087 }
 0x44f   : > { %v717_v29 = vmul.f32 %v1088_v28, %v1082_v15 }
 0x451   : > { %v718_v30 = vpack.c.bf16 %v717_v29, %v717_v29 }
 0x453   : > { %1023 = vmatmul.mubr.msk.bf16.vlgmr.msra.gmra.mrb[16].mxu0 %vm383_vm6, %v610_v27 }
 0x454   : > { %1033 = vmatpush3.bf16.msra.mxu0 %v618_v23  ;;  %1034 = vmatprep.mubr.msk.bf16.mxu0 %vm1098_vm0, %v1097_v0 }
 0x45b   : > { %1035 = vmatmul.mubr.msk.bf16.vlgmr.msra.gmra.mrb[20].mxu0 %vm383_vm6, %v718_v30 }
 0x51e   : > { %v540_v53 = vpop.f32.mrb[12].mxu0 }
 0x51f   : > { %763 = vrot.lane.b32.xlu1 %v540_v53, %s1102_s10  ;;  %v1012_v54 = vpop.f32.mrb[13].mxu0 }
 0x520   : > { %v543_v55 = vpop.f32.mrb[14].mxu0 }
 0x521   : > { %v1013_v58 = vpop.f32.mrb[15].mxu0 }
 0x526   : > { %v654_v60 = vpop.f32.mrb[16].mxu0 }
 0x527   : > { %767 = vrot.lane.b32.xlu1 %v654_v60, %s1103_s14  ;;  %v1024_v61 = vpop.f32.mrb[17].mxu0 }
 0x528   : > { %v657_v62 = vpop.f32.mrb[18].mxu0 }
 0x529   : > { %v1025_v63 = vpop.f32.mrb[19].mxu0 }
 0x52e   : > { %v756_v1 = vpop.f32.mrb[20].mxu0 }
 0x52f   : > { %771 = vrot.lane.b32.xlu0 %v756_v1, %s1101_s9  ;;  %v1036_v0 = vpop.f32.mrb[21].mxu0  ;;  %s295_s9 = scalar_lea.vmem %s1300_s1, %s1153_s23 }
 0x530   : > { %v759_v2 = vpop.f32.mrb[22].mxu0  ;;  %v779_v11 = vld [vmem:[%s295_s9] sm:$0xff] }
 0x531   : > { %v1037_v3 = vpop.f32.mrb[23].mxu0 }
 0x591   : > { %v764_v4 = vpop.permute.xlu1 %763 }
 0x592   : > { %v774_v6 = vsel %vm334_vm1, %v1209_v50, %v764_v4 }
 0x599   : > { %v768_v5 = vpop.permute.xlu1 %767 }
 0x59a   : > { %v776_v7 = vsel %vm775_vm8, %v774_v6, %v768_v5 }
 0x5a1   : > { %v772_v8 = vpop.permute.xlu0 %771 }
 0x5a2   : > { %v778_v9 = vsel %vm777_vm9, %v776_v7, %v772_v8 }
 0x5a3   : > { %v780_v10 = vpack.c.bf16 %v778_v9, %v778_v9 }
 0x5a5   : > { %1055 = vmatmul.mubr.bf16.vlgmr.msra.gmra.mrb[8].mxu1 %v780_v10 }
 0x678   : > { %v839_v12 = vpop.f32.mrb[8].mxu1 }
 0x679   : > { %v845_v13 = vadd.f32 %v839_v12, %v779_v11  ;;  %v1056_v14 = vpop.f32.mrb[9].mxu1 }
 0x67a   : > { %v842_v15 = vpop.f32.mrb[10].mxu1 }
 0x67b   : > { %846 = vst [vmem:[%s311_s8] sm:$0xff] %v845_v13  ;;  %v1057_v50 = vpop.f32.mrb[11].mxu1 }
 0x67c PF: > { %s16_s21 = sadd.s32 1, %s1095_s21  }
 0x67d   : > { %p13_p4 = scmp.ge.s32.totalorder %s16_s21, 4  }
 0x67f   :  { %15 = sbr.rel (!%p13_p4) target bundleno = 1 (0x1), region = 86 }

// kernel: forward.9
= control target key start
LH: loop header
LB: loop body
LE: loop exit
PB: predicated region body
PF: predicated region fallthrough
CT: control target
= control target key end

     0   :  { %s747_s0 = inlined_call_operand.vmem [shape: f32[16,128], index: 0, kind: input, shape index: {}]   ;;  %s748_s2 = inlined_call_operand.vmem [shape: f32[128,512], index: 2, kind: input, shape index: {}]   ;;  %s749_s1 = inlined_call_operand.vmem [shape: f32[1,128], index: 1, kind: input, shape index: {}]   ;;  %s750_s3 = inlined_call_operand.vmem [shape: f32[256,128], index: 3, kind: input, shape index: {}]   ;;  %s751_s4 = inlined_call_operand.vmem [shape: f32[16,128], index: 4, kind: output, shape index: {}]  }
   0x1   :  { %v435_v0 = vld [vmem:[%s747_s0] sm:$0xff]  ;;  %v440_v1 = vld [vmem:[%s747_s0 + $0x8] sm:$0xff]  ;;  %v48_v5 = vld [vmem:[%s748_s2 + $0x18] sm:$0xff] }
   0x2   :  { %v46_v2 = vld [vmem:[%s748_s2 + $0x8] sm:$0xff]  ;;  %v20_v3 = vmul.f32 %v435_v0, %v435_v0  ;;  %v52_v6 = vld [vmem:[%s748_s2 + $0x38] sm:$0xff]  ;;  %v45_v9 = vld [vmem:[%s748_s2] sm:$0xff]  ;;  %v21_v12 = vmul.f32 %v440_v1, %v440_v1 }
   0x3   :  { %v50_v4 = vld [vmem:[%s748_s2 + $0x28] sm:$0xff]  ;;  %v112_v8 = vpack.c.bf16 %v52_v6, %v48_v5  ;;  %v49_v10 = vld [vmem:[%s748_s2 + $0x20] sm:$0xff]  ;;  %v47_v11 = vld [vmem:[%s748_s2 + $0x10] sm:$0xff]  ;;  %v406_v6 = vmov 0  }
   0x4   :  { %v110_v7 = vpack.c.bf16 %v50_v4, %v46_v2  ;;  %22 = vadd.xlane.f32.xlu0 %v20_v3  ;;  %v109_v13 = vpack.c.bf16 %v49_v10, %v45_v9  ;;  %v51_v14 = vld [vmem:[%s748_s2 + $0x30] sm:$0xff]  ;;  %v54_v15 = vld [vmem:[%s748_s2 + $0x48] sm:$0xff]  ;;  %v56_v19 = vld [vmem:[%s748_s2 + $0x58] sm:$0xff]  ;;  %173 = vmatprep.mubr.bf16.mxu0 %v406_v6 }
   0x5   :  { %v58_v16 = vld [vmem:[%s748_s2 + $0x68] sm:$0xff]  ;;  %184 = vmatprep.subr.bf16.mxu1 %v112_v8  ;;  %v111_v17 = vpack.c.bf16 %v51_v14, %v47_v11  ;;  %v60_v20 = vld [vmem:[%s748_s2 + $0x78] sm:$0xff]  ;;  %v53_v21 = vld [vmem:[%s748_s2 + $0x40] sm:$0xff]  ;;  %216 = vmatprep.mubr.bf16.mxu1 %v406_v6 }
   0x6   :  { %141 = vmatprep.subr.bf16.mxu0 %v110_v7  ;;  %v114_v18 = vpack.c.bf16 %v58_v16, %v54_v15  ;;  %v116_v22 = vpack.c.bf16 %v60_v20, %v56_v19  ;;  %v57_v23 = vld [vmem:[%s748_s2 + $0x60] sm:$0xff]  ;;  %v55_v24 = vld [vmem:[%s748_s2 + $0x50] sm:$0xff]  ;;  %v62_v28 = vld [vmem:[%s748_s2 + $0x88] sm:$0xff] }
   0x7   :  { %142 = vmatpush1.bf16.msra.mxu0 %v109_v13  ;;  %v59_v25 = vld [vmem:[%s748_s2 + $0x70] sm:$0xff]  ;;  %185 = vmatpush1.bf16.msra.mxu1 %v111_v17  ;;  %v113_v26 = vpack.c.bf16 %v57_v23, %v53_v21  ;;  %v66_v29 = vld [vmem:[%s748_s2 + $0xa8] sm:$0xff]  ;;  %v64_v30 = vld [vmem:[%s748_s2 + $0x98] sm:$0xff] }
   0x8   :  { %143 = vmatprep.subr.bf16.mxu0 %v114_v18  ;;  %v115_v27 = vpack.c.bf16 %v59_v25, %v55_v24  ;;  %24 = vadd.xlane.f32.xlu0 %v21_v12  ;;  %v118_v31 = vpack.c.bf16 %v66_v29, %v62_v28  ;;  %v68_v32 = vld [vmem:[%s748_s2 + $0xb8] sm:$0xff]  ;;  %v61_v33 = vld [vmem:[%s748_s2 + $0x80] sm:$0xff]  ;;  %v63_v37 = vld [vmem:[%s748_s2 + $0x90] sm:$0xff] }
   0x9   :  { %186 = vmatprep.subr.bf16.mxu1 %v116_v22  ;;  %v65_v34 = vld [vmem:[%s748_s2 + $0xa0] sm:$0xff]  ;;  %v120_v35 = vpack.c.bf16 %v68_v32, %v64_v30  ;;  %v67_v38 = vld [vmem:[%s748_s2 + $0xb0] sm:$0xff]  ;;  %v70_v40 = vld [vmem:[%s748_s2 + $0xc8] sm:$0xff] }
   0xa   :  { %v117_v36 = vpack.c.bf16 %v65_v34, %v61_v33  ;;  %v119_v39 = vpack.c.bf16 %v67_v38, %v63_v37  ;;  %v74_v41 = vld [vmem:[%s748_s2 + $0xe8] sm:$0xff]  ;;  %v72_v42 = vld [vmem:[%s748_s2 + $0xd8] sm:$0xff]  ;;  %v69_v45 = vld [vmem:[%s748_s2 + $0xc0] sm:$0xff] }
   0xb   :  { %144 = vmatpush1.bf16.msra.mxu0 %v113_v26  ;;  %187 = vmatpush1.bf16.msra.mxu1 %v115_v27  ;;  %v122_v43 = vpack.c.bf16 %v74_v41, %v70_v40  ;;  %v76_v44 = vld [vmem:[%s748_s2 + $0xf8] sm:$0xff]  ;;  %v73_v46 = vld [vmem:[%s748_s2 + $0xe0] sm:$0xff]  ;;  %v71_v49 = vld [vmem:[%s748_s2 + $0xd0] sm:$0xff] }
   0xc   :  { %145 = vmatprep.subr.bf16.mxu0 %v118_v31  ;;  %188 = vmatprep.subr.bf16.mxu1 %v120_v35  ;;  %v124_v47 = vpack.c.bf16 %v76_v44, %v72_v42  ;;  %v121_v48 = vpack.c.bf16 %v73_v46, %v69_v45  ;;  %v75_v50 = vld [vmem:[%s748_s2 + $0xf0] sm:$0xff]  ;;  %v78_v52 = vld [vmem:[%s748_s2 + $0x108] sm:$0xff]  ;;  %v80_v54 = vld [vmem:[%s748_s2 + $0x118] sm:$0xff] }
   0xd   :  { %v123_v51 = vpack.c.bf16 %v75_v50, %v71_v49  ;;  %v82_v53 = vld [vmem:[%s748_s2 + $0x128] sm:$0xff]  ;;  %v84_v56 = vld [vmem:[%s748_s2 + $0x138] sm:$0xff]  ;;  %v77_v57 = vld [vmem:[%s748_s2 + $0x100] sm:$0xff] }
   0xe   :  { %v126_v55 = vpack.c.bf16 %v82_v53, %v78_v52  ;;  %v81_v58 = vld [vmem:[%s748_s2 + $0x120] sm:$0xff]  ;;  %v128_v59 = vpack.c.bf16 %v84_v56, %v80_v54  ;;  %v79_v61 = vld [vmem:[%s748_s2 + $0x110] sm:$0xff]  ;;  %v86_v63 = vld [vmem:[%s748_s2 + $0x148] sm:$0xff] }
   0xf   :  { %146 = vmatpush1.bf16.msra.mxu0 %v117_v36  ;;  %189 = vmatpush1.bf16.msra.mxu1 %v119_v39  ;;  %v125_v60 = vpack.c.bf16 %v81_v58, %v77_v57  ;;  %v83_v62 = vld [vmem:[%s748_s2 + $0x130] sm:$0xff]  ;;  %v90_v3 = vld [vmem:[%s748_s2 + $0x168] sm:$0xff]  ;;  %v88_v4 = vld [vmem:[%s748_s2 + $0x158] sm:$0xff] }
  0x10   :  { %147 = vmatprep.subr.bf16.mxu0 %v122_v43  ;;  %190 = vmatprep.subr.bf16.mxu1 %v124_v47  ;;  %v127_v2 = vpack.c.bf16 %v83_v62, %v79_v61  ;;  %v92_v5 = vld [vmem:[%s748_s2 + $0x178] sm:$0xff]  ;;  %v130_v7 = vpack.c.bf16 %v90_v3, %v86_v63  ;;  %v85_v9 = vld [vmem:[%s748_s2 + $0x140] sm:$0xff]  ;;  %v87_v11 = vld [vmem:[%s748_s2 + $0x150] sm:$0xff] }
  0x11   :  { %v132_v8 = vpack.c.bf16 %v92_v5, %v88_v4  ;;  %v89_v10 = vld [vmem:[%s748_s2 + $0x160] sm:$0xff]  ;;  %v91_v13 = vld [vmem:[%s748_s2 + $0x170] sm:$0xff]  ;;  %v94_v14 = vld [vmem:[%s748_s2 + $0x188] sm:$0xff] }
  0x12   :  { %v129_v12 = vpack.c.bf16 %v89_v10, %v85_v9  ;;  %v98_v15 = vld [vmem:[%s748_s2 + $0x1a8] sm:$0xff]  ;;  %v131_v16 = vpack.c.bf16 %v91_v13, %v87_v11  ;;  %v96_v18 = vld [vmem:[%s748_s2 + $0x198] sm:$0xff]  ;;  %v93_v20 = vld [vmem:[%s748_s2 + $0x180] sm:$0xff] }
  0x13   :  { %148 = vmatpush1.bf16.msra.mxu0 %v121_v48  ;;  %191 = vmatpush1.bf16.msra.mxu1 %v123_v51  ;;  %v134_v17 = vpack.c.bf16 %v98_v15, %v94_v14  ;;  %v100_v19 = vld [vmem:[%s748_s2 + $0x1b8] sm:$0xff]  ;;  %v97_v22 = vld [vmem:[%s748_s2 + $0x1a0] sm:$0xff]  ;;  %v95_v23 = vld [vmem:[%s748_s2 + $0x190] sm:$0xff] }
  0x14   :  { %149 = vmatprep.subr.bf16.mxu0 %v126_v55  ;;  %192 = vmatprep.subr.bf16.mxu1 %v128_v59  ;;  %v136_v21 = vpack.c.bf16 %v100_v19, %v96_v18  ;;  %v99_v24 = vld [vmem:[%s748_s2 + $0x1b0] sm:$0xff]  ;;  %v133_v25 = vpack.c.bf16 %v97_v22, %v93_v20  ;;  %v102_v26 = vld [vmem:[%s748_s2 + $0x1c8] sm:$0xff]  ;;  %v104_v28 = vld [vmem:[%s748_s2 + $0x1d8] sm:$0xff] }
  0x15   :  { %v106_v27 = vld [vmem:[%s748_s2 + $0x1e8] sm:$0xff]  ;;  %v135_v29 = vpack.c.bf16 %v99_v24, %v95_v23  ;;  %v108_v31 = vld [vmem:[%s748_s2 + $0x1f8] sm:$0xff]  ;;  %v101_v32 = vld [vmem:[%s748_s2 + $0x1c0] sm:$0xff] }
  0x16   :  { %v138_v30 = vpack.c.bf16 %v106_v27, %v102_v26  ;;  %v105_v33 = vld [vmem:[%s748_s2 + $0x1e0] sm:$0xff]  ;;  %v140_v34 = vpack.c.bf16 %v108_v31, %v104_v28  ;;  %v103_v35 = vld [vmem:[%s748_s2 + $0x1d0] sm:$0xff]  ;;  %v278_v54 = vld [vmem:[%s750_s3 + $0x88] sm:$0xff] }
  0x17   :  { %150 = vmatpush1.bf16.msra.mxu0 %v125_v60  ;;  %193 = vmatpush1.bf16.msra.mxu1 %v127_v2  ;;  %v107_v36 = vld [vmem:[%s748_s2 + $0x1f0] sm:$0xff]  ;;  %v137_v37 = vpack.c.bf16 %v105_v33, %v101_v32  ;;  %v358_v48 = vld [vmem:[%s749_s1] ss:$0 sm:$0xff]  ;;  %v262_v57 = vld [vmem:[%s750_s3 + $0x8] sm:$0xff] }
  0x18   :  { %151 = vmatprep.subr.bf16.mxu0 %v130_v7  ;;  %194 = vmatprep.subr.bf16.mxu1 %v132_v8  ;;  %v139_v38 = vpack.c.bf16 %v107_v36, %v103_v35  ;;  %v277_v53 = vld [vmem:[%s750_s3 + $0x80] sm:$0xff]  ;;  %v279_v59 = vld [vmem:[%s750_s3 + $0x90] sm:$0xff]  ;;  %v280_v60 = vld [vmem:[%s750_s3 + $0x98] sm:$0xff] }
  0x19   :  { %v301_v55 = vpack.c.bf16 %v278_v54, %v277_v53  ;;  %v261_v56 = vld [vmem:[%s750_s3] sm:$0xff]  ;;  %v302_v61 = vpack.c.bf16 %v280_v60, %v279_v59  ;;  %v263_v62 = vld [vmem:[%s750_s3 + $0x10] sm:$0xff]  ;;  %v264_v63 = vld [vmem:[%s750_s3 + $0x18] sm:$0xff] }
  0x1a   :  { %v293_v58 = vpack.c.bf16 %v262_v57, %v261_v56  ;;  %v294_v2 = vpack.c.bf16 %v264_v63, %v263_v62  ;;  %v281_v3 = vld [vmem:[%s750_s3 + $0xa0] sm:$0xff]  ;;  %v282_v4 = vld [vmem:[%s750_s3 + $0xa8] sm:$0xff]  ;;  %v283_v9 = vld [vmem:[%s750_s3 + $0xb0] sm:$0xff] }
  0x1b   :  { %152 = vmatpush1.bf16.msra.mxu0 %v129_v12  ;;  %195 = vmatpush1.bf16.msra.mxu1 %v131_v16  ;;  %v303_v5 = vpack.c.bf16 %v282_v4, %v281_v3  ;;  %v265_v6 = vld [vmem:[%s750_s3 + $0x20] sm:$0xff]  ;;  %v266_v7 = vld [vmem:[%s750_s3 + $0x28] sm:$0xff]  ;;  %v284_v10 = vld [vmem:[%s750_s3 + $0xb8] sm:$0xff] }
  0x1c   :  { %153 = vmatprep.subr.bf16.mxu0 %v134_v17  ;;  %196 = vmatprep.subr.bf16.mxu1 %v136_v21  ;;  %v295_v8 = vpack.c.bf16 %v266_v7, %v265_v6  ;;  %v304_v11 = vpack.c.bf16 %v284_v10, %v283_v9  ;;  %v267_v12 = vld [vmem:[%s750_s3 + $0x30] sm:$0xff]  ;;  %v268_v13 = vld [vmem:[%s750_s3 + $0x38] sm:$0xff]  ;;  %v285_v15 = vld [vmem:[%s750_s3 + $0xc0] sm:$0xff] }
  0x1d   :  { %v296_v14 = vpack.c.bf16 %v268_v13, %v267_v12  ;;  %v286_v16 = vld [vmem:[%s750_s3 + $0xc8] sm:$0xff]  ;;  %v269_v18 = vld [vmem:[%s750_s3 + $0x40] sm:$0xff]  ;;  %v287_v21 = vld [vmem:[%s750_s3 + $0xd0] sm:$0xff] }
  0x1e   :  { %v305_v17 = vpack.c.bf16 %v286_v16, %v285_v15  ;;  %v270_v19 = vld [vmem:[%s750_s3 + $0x48] sm:$0xff]  ;;  %v288_v22 = vld [vmem:[%s750_s3 + $0xd8] sm:$0xff]  ;;  %v271_v24 = vld [vmem:[%s750_s3 + $0x50] sm:$0xff] }
  0x1f   :  { %154 = vmatpush1.bf16.msra.mxu0 %v133_v25  ;;  %197 = vmatpush1.bf16.msra.mxu1 %v135_v29  ;;  %v297_v20 = vpack.c.bf16 %v270_v19, %v269_v18  ;;  %v306_v23 = vpack.c.bf16 %v288_v22, %v287_v21  ;;  %v272_v25 = vld [vmem:[%s750_s3 + $0x58] sm:$0xff]  ;;  %v289_v27 = vld [vmem:[%s750_s3 + $0xe0] sm:$0xff]  ;;  %v290_v28 = vld [vmem:[%s750_s3 + $0xe8] sm:$0xff] }
  0x20   :  { %155 = vmatprep.subr.bf16.mxu0 %v138_v30  ;;  %198 = vmatprep.subr.bf16.mxu1 %v140_v34  ;;  %v298_v26 = vpack.c.bf16 %v272_v25, %v271_v24  ;;  %v307_v29 = vpack.c.bf16 %v290_v28, %v289_v27  ;;  %v273_v30 = vld [vmem:[%s750_s3 + $0x60] sm:$0xff]  ;;  %v274_v31 = vld [vmem:[%s750_s3 + $0x68] sm:$0xff]  ;;  %v291_v33 = vld [vmem:[%s750_s3 + $0xf0] sm:$0xff] }
  0x21   :  { %v299_v32 = vpack.c.bf16 %v274_v31, %v273_v30  ;;  %v292_v34 = vld [vmem:[%s750_s3 + $0xf8] sm:$0xff]  ;;  %v275_v36 = vld [vmem:[%s750_s3 + $0x70] sm:$0xff] }
  0x22   :  { %v308_v35 = vpack.c.bf16 %v292_v34, %v291_v33 }
  0x23   :  { %156 = vmatpush1.bf16.msra.mxu0 %v137_v37  ;;  %199 = vmatpush1.bf16.msra.mxu1 %v139_v38  ;;  %v276_v37 = vld [vmem:[%s750_s3 + $0x78] sm:$0xff] }
  0x24   :  { %363 = vmatprep.subr.bf16.mxu0 %v301_v55  ;;  %v300_v38 = vpack.c.bf16 %v276_v37, %v275_v36 }
  0x91   :  { %v23_v39 = vpop.xlane.xlu0 %22 }
  0x92   :  { %v27_v40 = vmul.f32 0.0078125, %v23_v39 }
  0x94   :  { %v29_v41 = vadd.f32 1e-05, %v27_v40 }
  0x95   :  { %v25_v42 = vpop.xlane.xlu0 %24 }
  0x96   :  { %386 = vrsqrt.f32 %v29_v41  ;;  %v28_v43 = vmul.f32 0.0078125, %v25_v42 }
  0x98   :  { %v30_v44 = vadd.f32 1e-05, %v28_v43 }
  0x9a   :  { %388 = vrsqrt.f32 %v30_v44 }
  0xa0   :  { %v387_v45 = vpop.eup %386 }
  0xa1   :  { %v33_v46 = vmul.f32 %v387_v45, %v435_v0 }
  0xa3   :  { %v42_v50 = vmul.f32 %v358_v48, %v33_v46 }
  0xa4   :  { %v389_v47 = vpop.eup %388 }
  0xa5   :  { %v34_v49 = vmul.f32 %v389_v47, %v440_v1 }
  0xa7   :  { %v43_v51 = vmul.f32 %v358_v48, %v34_v49 }
  0xa9   :  { %v44_v52 = vpack.c.bf16 %v43_v51, %v42_v50 }
  0xab   :  { %174 = vmatmul.mubr.bf16.vlgmr.msra.gmra.mrb[0].mxu0 %v44_v52  ;;  %217 = vmatmul.mubr.bf16.vlgmr.msra.gmra.mrb[0].mxu1 %v44_v52 }
  0xac   :  { %364 = vmatpush3.bf16.msra.mxu0 %v293_v58 }
  0xad   :  { %365 = vmatprep.subr.bf16.mxu0 %v302_v61 }
  0xb0   :  { %366 = vmatpush3.bf16.msra.mxu0 %v294_v2 }
  0xb1   :  { %367 = vmatprep.subr.bf16.mxu0 %v303_v5 }
  0xb4   :  { %368 = vmatpush3.bf16.msra.mxu0 %v295_v8 }
  0xb5   :  { %369 = vmatprep.subr.bf16.mxu0 %v304_v11 }
  0xb8   :  { %370 = vmatpush3.bf16.msra.mxu0 %v296_v14 }
  0xb9   :  { %371 = vmatprep.subr.bf16.mxu0 %v305_v17 }
  0xbc   :  { %372 = vmatpush3.bf16.msra.mxu0 %v297_v20 }
  0xbd   :  { %373 = vmatprep.subr.bf16.mxu0 %v306_v23 }
  0xc0   :  { %374 = vmatpush3.bf16.msra.mxu0 %v298_v26 }
  0xc1   :  { %375 = vmatprep.subr.bf16.mxu0 %v307_v29 }
  0xc4   :  { %376 = vmatpush3.bf16.msra.mxu0 %v299_v32 }
  0xc5   :  { %377 = vmatprep.subr.bf16.mxu0 %v308_v35 }
  0xc8   :  { %378 = vmatpush3.bf16.msra.mxu0 %v300_v38 }
 0x17e   :  { %v175_v39 = vpop.f32.mrb[0].mxu0  ;;  %v218_v40 = vpop.f32.mrb[0].mxu1 }
 0x17f   :  { %v359_v41 = vmul.f32 -1.442695, %v175_v39  ;;  %v177_v42 = vpop.f32.mrb[1].mxu0  ;;  %v220_v43 = vpop.f32.mrb[1].mxu1 }
 0x180   :  { %v360_v44 = vmul.f32 -1.442695, %v177_v42  ;;  %v179_v45 = vpop.f32.mrb[2].mxu0  ;;  %v222_v46 = vpop.f32.mrb[2].mxu1 }
 0x181   :  { %390 = vpow2.f32 %v359_v41  ;;  %v361_v47 = vmul.f32 -1.442695, %v179_v45  ;;  %v181_v48 = vpop.f32.mrb[3].mxu0  ;;  %v224_v49 = vpop.f32.mrb[3].mxu1 }
 0x182   :  { %392 = vpow2.f32 %v360_v44  ;;  %v362_v50 = vmul.f32 -1.442695, %v181_v48 }
 0x183   :  { %394 = vpow2.f32 %v361_v47 }
 0x184   :  { %396 = vpow2.f32 %v362_v50 }
 0x18b   :  { %v391_v51 = vpop.eup %390 }
 0x18c   :  { %v393_v52 = vpop.eup %392  ;;  %v239_v53 = vadd.f32 1.0, %v391_v51 }
 0x18d   :  { %v395_v54 = vpop.eup %394  ;;  %v240_v55 = vadd.f32 1.0, %v393_v52 }
 0x18e   :  { %v397_v56 = vpop.eup %396  ;;  %398 = vrcp.f32 %v239_v53  ;;  %v241_v57 = vadd.f32 1.0, %v395_v54 }
 0x18f   :  { %400 = vrcp.f32 %v240_v55  ;;  %v242_v58 = vadd.f32 1.0, %v397_v56 }
 0x190   :  { %402 = vrcp.f32 %v241_v57 }
 0x191   :  { %404 = vrcp.f32 %v242_v58 }
 0x198   :  { %v399_v59 = vpop.eup %398 }
 0x199   :  { %v401_v60 = vpop.eup %400  ;;  %v251_v61 = vmul.f32 %v399_v59, %v175_v39 }
 0x19a   :  { %v403_v62 = vpop.eup %402  ;;  %v252_v63 = vmul.f32 %v401_v60, %v177_v42 }
 0x19b   :  { %v405_v2 = vpop.eup %404  ;;  %v255_v3 = vmul.f32 %v251_v61, %v218_v40  ;;  %v253_v4 = vmul.f32 %v403_v62, %v179_v45 }
 0x19c   :  { %v256_v5 = vmul.f32 %v252_v63, %v220_v43  ;;  %v254_v6 = vmul.f32 %v405_v2, %v181_v48 }
 0x19d   :  { %v257_v7 = vmul.f32 %v253_v4, %v222_v46 }
 0x19e   :  { %v258_v8 = vmul.f32 %v254_v6, %v224_v49 }
 0x19f   :  { %v259_v9 = vpack.c.bf16 %v257_v7, %v255_v3 }
 0x1a0   :  { %v260_v10 = vpack.c.bf16 %v258_v8, %v256_v5 }
 0x1a2   :  { %341 = vmatprep.mubr.bf16.mxu0 %v260_v10 }
 0x1a3   :  { %342 = vmatmul.mubr.bf16.vlgmr.msra.gmra.mrb[4].mxu0 %v259_v9 }
 0x276   :  { %v379_v11 = vpop.f32.mrb[4].mxu0 }
 0x277   :  { %v380_v12 = vpop.f32.mrb[5].mxu0 }
 0x278   :  { %v381_v13 = vadd.f32 %v380_v12, %v379_v11  ;;  %v382_v14 = vpop.f32.mrb[6].mxu0 }
 0x279   :  { %v383_v15 = vpop.f32.mrb[7].mxu0 }
 0x27a   :  { %v350_v16 = vadd.f32 %v381_v13, %v435_v0  ;;  %v384_v17 = vadd.f32 %v383_v15, %v382_v14 }
 0x27c   :  { %352 = vst [vmem:[%s751_s4] sm:$0xff] %v350_v16  ;;  %v351_v18 = vadd.f32 %v384_v17, %v440_v1 }
 0x27e   :  { %353 = vst [vmem:[%s751_s4 + $0x8] sm:$0xff] %v351_v18 }

</bundles_post_ra>
